<compile_context>
chip_gen: v7x
topology: tpu7x:2x2x1
jax: 0.10.0
libtpu: 0.0.40
codegen_flags: <defaults>
</compile_context>

<pallas_src>
import functools

import jax
import jax.numpy as jnp
from jax import lax
from jax.experimental import pallas as pl
from jax.experimental.pallas import tpu as pltpu

LANE = 128
SUBLANE = 8


def _round_up(x, m):
    return ((x + m - 1) // m) * m


def _pad_axis(x, target, axis):
    pad = target - x.shape[axis]
    if pad <= 0:
        return x
    widths = [(0, 0)] * x.ndim
    widths[axis] = (0, pad)
    return jnp.pad(x, widths)


def pooling_kernel(ids_ref, table_ref, w1_ref, b1_ref, w2_ref, b2_ref,
                   out_ref, pooled_ref, *, seq_len):
    """One batch tile: in-VMEM gather + max-pool + tanh + relu->fc1 -> relu->fc2."""
    block_b, emb_dim = pooled_ref.shape
    tile = pl.program_id(0)
    unroll = seq_len <= 32

    # ---- running max over the sequence, gathered from the resident table ----
    for b in range(block_b):                        # static unroll over the tile
        base = (tile * block_b + b) * seq_len       # flat offset into the ids

        def body(l, m):
            tok = ids_ref[base + l]                 # scalar read from SMEM ids
            row = table_ref[pl.ds(tok, 1), :]       # (1, E) dynamic VMEM gather
            return jnp.maximum(m, row)

        m = lax.fori_loop(0, seq_len, body,
                          jnp.full((1, emb_dim), -jnp.inf, jnp.float32),
                          unroll=unroll)
        pooled_ref[b:b + 1, :] = m

    # tanh is strictly increasing -> tanh(max(x)) == max(tanh(x))  (exact).
    pooled = jnp.tanh(pooled_ref[...])              # (Bt, E)

    # ---- batched linear path: one lane-dense MXU call per layer per tile ----
    h = jnp.maximum(pooled, 0.0)
    h = jnp.dot(h, w1_ref[...], preferred_element_type=jnp.float32,
                precision=jax.lax.Precision.HIGHEST) + b1_ref[...]     # (Bt, Hp)
    h = jnp.maximum(h, 0.0)
    y = jnp.dot(h, w2_ref[...], preferred_element_type=jnp.float32,
                precision=jax.lax.Precision.HIGHEST) + b2_ref[...]     # (Bt, Cp)
    out_ref[...] = y.astype(out_ref.dtype)


def pooling_forward(token_ids, embed_table, w1_t, b1, w2_t, b2, *, block_b=None):
    """token_ids: (B, L) int32; embed_table: (V, E); w1_t: (E, H); b1: (1, H);
    w2_t: (H, C); b2: (1, C).  Returns (B, C) float32 logits."""
    B, L = token_ids.shape
    V, E = embed_table.shape
    H = w1_t.shape[1]
    C = w2_t.shape[1]

    Hp = _round_up(max(H, LANE), LANE)
    Cp = _round_up(max(C, LANE), LANE)

    if block_b is None:
        block_b = min(128, _round_up(B, SUBLANE))   # 8..128 rows per tile
    Bp = _round_up(B, block_b)
    n_tiles = Bp // block_b

    # Zero-padded, lane-dense weights (padding cannot leak: padded bias = 0,
    # padded weight rows/cols = 0, padded output columns are sliced off).
    w1_p = _pad_axis(w1_t.astype(jnp.float32), Hp, 1)                       # (E, Hp)
    b1_p = _pad_axis(b1.astype(jnp.float32), Hp, 1)                         # (1, Hp)
    w2_p = _pad_axis(_pad_axis(w2_t.astype(jnp.float32), Hp, 0), Cp, 1)     # (Hp, Cp)
    b2_p = _pad_axis(b2.astype(jnp.float32), Cp, 1)                         # (1, Cp)

    table = embed_table.astype(jnp.float32)                                 # (V, E)

    # Flatten ids to 1-D before scalar prefetch (avoids 2-D SMEM padding blow-up).
    # Padded batch rows reuse token id 0 (valid index; their rows are sliced off).
    ids_flat = _pad_axis(token_ids.astype(jnp.int32), Bp, 0).reshape(Bp * L)

    kernel = functools.partial(pooling_kernel, seq_len=L)

    grid_spec = pltpu.PrefetchScalarGridSpec(
        num_scalar_prefetch=1,
        grid=(n_tiles,),
        in_specs=[
            pl.BlockSpec((V, E), lambda i, ids: (0, 0)),     # VMEM-resident table
            pl.BlockSpec((E, Hp), lambda i, ids: (0, 0)),
            pl.BlockSpec((1, Hp), lambda i, ids: (0, 0)),
            pl.BlockSpec((Hp, Cp), lambda i, ids: (0, 0)),
            pl.BlockSpec((1, Cp), lambda i, ids: (0, 0)),
        ],
        out_specs=pl.BlockSpec((block_b, Cp), lambda i, ids: (i, 0)),
        scratch_shapes=[pltpu.VMEM((block_b, E), jnp.float32)],   # running max
    )

    out_padded = pl.pallas_call(
        kernel,
        out_shape=jax.ShapeDtypeStruct((Bp, Cp), jnp.float32),
        grid_spec=grid_spec,
        compiler_params=pltpu.CompilerParams(
            dimension_semantics=("parallel",),
        ),
    )(ids_flat, table, w1_p, b1_p, w2_p, b2_p)

    return out_padded[:B, :C]


if __name__ == "__main__":
    # Small shapes consistent with the module's __init__ / forward.
    vocab_size = 50
    embed_dim = 32
    label_vocab = 4
    batch = 2
    seq = 8
    hidden = embed_dim // 2

    key = jax.random.PRNGKey(0)
    k_emb, k_w1, k_b1, k_w2, k_b2, k_ids = jax.random.split(key, 6)

    # Deterministic synthetic parameters (PyTorch Linear stores (out, in);
    # pre-transpose to (in, out) for the kernel).
    embed_table = jax.random.normal(k_emb, (vocab_size, embed_dim), jnp.float32)
    w1_t = (0.1 * jax.random.normal(k_w1, (hidden, embed_dim), jnp.float32)).T
    b1 = 0.1 * jax.random.normal(k_b1, (1, hidden), jnp.float32)
    w2_t = (0.1 * jax.random.normal(k_w2, (label_vocab, hidden), jnp.float32)).T
    b2 = 0.1 * jax.random.normal(k_b2, (1, label_vocab), jnp.float32)

    token_ids = jax.random.randint(k_ids, (batch, seq), 0, vocab_size, jnp.int32)

    out = pooling_forward(token_ids, embed_table, w1_t, b1, w2_t, b2)
    jax.block_until_ready(out)

    # Pure-JAX reference with the ORIGINAL op order (tanh before max).
    emb = jnp.take(embed_table, token_ids, axis=0)               # (B, L, E)
    ref = jnp.max(jnp.tanh(emb), axis=1)                         # (B, E)
    ref = jnp.dot(jnp.maximum(ref, 0.0), w1_t,
                  precision=jax.lax.Precision.HIGHEST) + b1
    ref = jnp.dot(jnp.maximum(ref, 0.0), w2_t,
                  precision=jax.lax.Precision.HIGHEST) + b2

    assert out.shape == (batch, label_vocab)
    assert jnp.allclose(out, ref, atol=1e-4, rtol=1e-4), (out, ref)

    print("KERNEL_OK")
</pallas_src>

<mosaic_0001>
module attributes {stable_mosaic.version = 11 : i64} {
  func.func @pooling_kernel(%arg0: i32, %arg1: memref<64xi32, #tpu.memory_space<smem>>, %arg2: memref<50x32xf32, #tpu.memory_space<vmem>>, %arg3: memref<32x128xf32, #tpu.memory_space<vmem>>, %arg4: memref<1x128xf32, #tpu.memory_space<vmem>>, %arg5: memref<128x128xf32, #tpu.memory_space<vmem>>, %arg6: memref<1x128xf32, #tpu.memory_space<vmem>>, %arg7: memref<8x128xf32, #tpu.memory_space<vmem>>, %arg8: memref<8x32xf32, #tpu.memory_space<vmem>>) attributes {dimension_semantics = [#tpu.dimension_semantics<parallel>], iteration_bounds = array<i64: 1>, scalar_prefetch = 1 : i64, scratch_operands = 1 : i64, tpu.core_type = #tpu.core_type<tc>, window_params = [{pipeline_mode = #tpu.pipeline_mode<synchronous>, transform_indices = @transform_0, window_bounds = array<i64: 50, 32>}, {pipeline_mode = #tpu.pipeline_mode<synchronous>, transform_indices = @transform_1, window_bounds = array<i64: 32, 128>}, {pipeline_mode = #tpu.pipeline_mode<synchronous>, transform_indices = @transform_2, window_bounds = array<i64: 1, 128>}, {pipeline_mode = #tpu.pipeline_mode<synchronous>, transform_indices = @transform_3, window_bounds = array<i64: 128, 128>}, {pipeline_mode = #tpu.pipeline_mode<synchronous>, transform_indices = @transform_4, window_bounds = array<i64: 1, 128>}, {transform_indices = @transform_5, window_bounds = array<i64: 8, 128>}]} {
    %c8_i32 = arith.constant 8 : i32
    %0 = arith.muli %arg0, %c8_i32 : i32
    %c0_i32 = arith.constant 0 : i32
    %1 = arith.addi %0, %c0_i32 : i32
    %c8_i32_0 = arith.constant 8 : i32
    %2 = arith.muli %1, %c8_i32_0 : i32
    %cst = arith.constant 0xFF800000 : f32
    %3 = vector.broadcast %cst : f32 to vector<1x32xf32>
    %c0_i32_1 = arith.constant 0 : i32
    %4 = arith.addi %2, %c0_i32_1 : i32
    %5 = arith.index_cast %4 : i32 to index
    %6 = memref.load %arg1[%5] : memref<64xi32, #tpu.memory_space<smem>>
    %7 = arith.index_cast %6 : i32 to index
    %c0 = arith.constant 0 : index
    %8 = vector.load %arg2[%7, %c0] : memref<50x32xf32, #tpu.memory_space<vmem>>, vector<1x32xf32>
    %9 = arith.maximumf %3, %8 : vector<1x32xf32>
    %c1_i32 = arith.constant 1 : i32
    %10 = arith.addi %2, %c1_i32 : i32
    %11 = arith.index_cast %10 : i32 to index
    %12 = memref.load %arg1[%11] : memref<64xi32, #tpu.memory_space<smem>>
    %13 = arith.index_cast %12 : i32 to index
    %c0_2 = arith.constant 0 : index
    %14 = vector.load %arg2[%13, %c0_2] : memref<50x32xf32, #tpu.memory_space<vmem>>, vector<1x32xf32>
    %15 = arith.maximumf %9, %14 : vector<1x32xf32>
    %c2_i32 = arith.constant 2 : i32
    %16 = arith.addi %2, %c2_i32 : i32
    %17 = arith.index_cast %16 : i32 to index
    %18 = memref.load %arg1[%17] : memref<64xi32, #tpu.memory_space<smem>>
    %19 = arith.index_cast %18 : i32 to index
    %c0_3 = arith.constant 0 : index
    %20 = vector.load %arg2[%19, %c0_3] : memref<50x32xf32, #tpu.memory_space<vmem>>, vector<1x32xf32>
    %21 = arith.maximumf %15, %20 : vector<1x32xf32>
    %c3_i32 = arith.constant 3 : i32
    %22 = arith.addi %2, %c3_i32 : i32
    %23 = arith.index_cast %22 : i32 to index
    %24 = memref.load %arg1[%23] : memref<64xi32, #tpu.memory_space<smem>>
    %25 = arith.index_cast %24 : i32 to index
    %c0_4 = arith.constant 0 : index
    %26 = vector.load %arg2[%25, %c0_4] : memref<50x32xf32, #tpu.memory_space<vmem>>, vector<1x32xf32>
    %27 = arith.maximumf %21, %26 : vector<1x32xf32>
    %c4_i32 = arith.constant 4 : i32
    %28 = arith.addi %2, %c4_i32 : i32
    %29 = arith.index_cast %28 : i32 to index
    %30 = memref.load %arg1[%29] : memref<64xi32, #tpu.memory_space<smem>>
    %31 = arith.index_cast %30 : i32 to index
    %c0_5 = arith.constant 0 : index
    %32 = vector.load %arg2[%31, %c0_5] : memref<50x32xf32, #tpu.memory_space<vmem>>, vector<1x32xf32>
    %33 = arith.maximumf %27, %32 : vector<1x32xf32>
    %c5_i32 = arith.constant 5 : i32
    %34 = arith.addi %2, %c5_i32 : i32
    %35 = arith.index_cast %34 : i32 to index
    %36 = memref.load %arg1[%35] : memref<64xi32, #tpu.memory_space<smem>>
    %37 = arith.index_cast %36 : i32 to index
    %c0_6 = arith.constant 0 : index
    %38 = vector.load %arg2[%37, %c0_6] : memref<50x32xf32, #tpu.memory_space<vmem>>, vector<1x32xf32>
    %39 = arith.maximumf %33, %38 : vector<1x32xf32>
    %c6_i32 = arith.constant 6 : i32
    %40 = arith.addi %2, %c6_i32 : i32
    %41 = arith.index_cast %40 : i32 to index
    %42 = memref.load %arg1[%41] : memref<64xi32, #tpu.memory_space<smem>>
    %43 = arith.index_cast %42 : i32 to index
    %c0_7 = arith.constant 0 : index
    %44 = vector.load %arg2[%43, %c0_7] : memref<50x32xf32, #tpu.memory_space<vmem>>, vector<1x32xf32>
    %45 = arith.maximumf %39, %44 : vector<1x32xf32>
    %c7_i32 = arith.constant 7 : i32
    %46 = arith.addi %2, %c7_i32 : i32
    %47 = arith.index_cast %46 : i32 to index
    %48 = memref.load %arg1[%47] : memref<64xi32, #tpu.memory_space<smem>>
    %49 = arith.index_cast %48 : i32 to index
    %c0_8 = arith.constant 0 : index
    %50 = vector.load %arg2[%49, %c0_8] : memref<50x32xf32, #tpu.memory_space<vmem>>, vector<1x32xf32>
    %51 = arith.maximumf %45, %50 : vector<1x32xf32>
    %c8_i32_9 = arith.constant 8 : i32
    %c0_10 = arith.constant 0 : index
    %c0_11 = arith.constant 0 : index
    %52 = vector.load %arg8[%c0_10, %c0_11] : memref<8x32xf32, #tpu.memory_space<vmem>>, vector<1x32xf32>
    tpu.vector_store %arg8[%c0_10, %c0_11], %51 {strides = array<i32>} : memref<8x32xf32, #tpu.memory_space<vmem>>, vector<1x32xf32>,
    %c8_i32_12 = arith.constant 8 : i32
    %53 = arith.muli %arg0, %c8_i32_12 : i32
    %c1_i32_13 = arith.constant 1 : i32
    %54 = arith.addi %53, %c1_i32_13 : i32
    %c8_i32_14 = arith.constant 8 : i32
    %55 = arith.muli %54, %c8_i32_14 : i32
    %cst_15 = arith.constant 0xFF800000 : f32
    %56 = vector.broadcast %cst_15 : f32 to vector<1x32xf32>
    %c0_i32_16 = arith.constant 0 : i32
    %57 = arith.addi %55, %c0_i32_16 : i32
    %58 = arith.index_cast %57 : i32 to index
    %59 = memref.load %arg1[%58] : memref<64xi32, #tpu.memory_space<smem>>
    %60 = arith.index_cast %59 : i32 to index
    %c0_17 = arith.constant 0 : index
    %61 = vector.load %arg2[%60, %c0_17] : memref<50x32xf32, #tpu.memory_space<vmem>>, vector<1x32xf32>
    %62 = arith.maximumf %56, %61 : vector<1x32xf32>
    %c1_i32_18 = arith.constant 1 : i32
    %63 = arith.addi %55, %c1_i32_18 : i32
    %64 = arith.index_cast %63 : i32 to index
    %65 = memref.load %arg1[%64] : memref<64xi32, #tpu.memory_space<smem>>
    %66 = arith.index_cast %65 : i32 to index
    %c0_19 = arith.constant 0 : index
    %67 = vector.load %arg2[%66, %c0_19] : memref<50x32xf32, #tpu.memory_space<vmem>>, vector<1x32xf32>
    %68 = arith.maximumf %62, %67 : vector<1x32xf32>
    %c2_i32_20 = arith.constant 2 : i32
    %69 = arith.addi %55, %c2_i32_20 : i32
    %70 = arith.index_cast %69 : i32 to index
    %71 = memref.load %arg1[%70] : memref<64xi32, #tpu.memory_space<smem>>
    %72 = arith.index_cast %71 : i32 to index
    %c0_21 = arith.constant 0 : index
    %73 = vector.load %arg2[%72, %c0_21] : memref<50x32xf32, #tpu.memory_space<vmem>>, vector<1x32xf32>
    %74 = arith.maximumf %68, %73 : vector<1x32xf32>
    %c3_i32_22 = arith.constant 3 : i32
    %75 = arith.addi %55, %c3_i32_22 : i32
    %76 = arith.index_cast %75 : i32 to index
    %77 = memref.load %arg1[%76] : memref<64xi32, #tpu.memory_space<smem>>
    %78 = arith.index_cast %77 : i32 to index
    %c0_23 = arith.constant 0 : index
    %79 = vector.load %arg2[%78, %c0_23] : memref<50x32xf32, #tpu.memory_space<vmem>>, vector<1x32xf32>
    %80 = arith.maximumf %74, %79 : vector<1x32xf32>
    %c4_i32_24 = arith.constant 4 : i32
    %81 = arith.addi %55, %c4_i32_24 : i32
    %82 = arith.index_cast %81 : i32 to index
    %83 = memref.load %arg1[%82] : memref<64xi32, #tpu.memory_space<smem>>
    %84 = arith.index_cast %83 : i32 to index
    %c0_25 = arith.constant 0 : index
    %85 = vector.load %arg2[%84, %c0_25] : memref<50x32xf32, #tpu.memory_space<vmem>>, vector<1x32xf32>
    %86 = arith.maximumf %80, %85 : vector<1x32xf32>
    %c5_i32_26 = arith.constant 5 : i32
    %87 = arith.addi %55, %c5_i32_26 : i32
    %88 = arith.index_cast %87 : i32 to index
    %89 = memref.load %arg1[%88] : memref<64xi32, #tpu.memory_space<smem>>
    %90 = arith.index_cast %89 : i32 to index
    %c0_27 = arith.constant 0 : index
    %91 = vector.load %arg2[%90, %c0_27] : memref<50x32xf32, #tpu.memory_space<vmem>>, vector<1x32xf32>
    %92 = arith.maximumf %86, %91 : vector<1x32xf32>
    %c6_i32_28 = arith.constant 6 : i32
    %93 = arith.addi %55, %c6_i32_28 : i32
    %94 = arith.index_cast %93 : i32 to index
    %95 = memref.load %arg1[%94] : memref<64xi32, #tpu.memory_space<smem>>
    %96 = arith.index_cast %95 : i32 to index
    %c0_29 = arith.constant 0 : index
    %97 = vector.load %arg2[%96, %c0_29] : memref<50x32xf32, #tpu.memory_space<vmem>>, vector<1x32xf32>
    %98 = arith.maximumf %92, %97 : vector<1x32xf32>
    %c7_i32_30 = arith.constant 7 : i32
    %99 = arith.addi %55, %c7_i32_30 : i32
    %100 = arith.index_cast %99 : i32 to index
    %101 = memref.load %arg1[%100] : memref<64xi32, #tpu.memory_space<smem>>
    %102 = arith.index_cast %101 : i32 to index
    %c0_31 = arith.constant 0 : index
    %103 = vector.load %arg2[%102, %c0_31] : memref<50x32xf32, #tpu.memory_space<vmem>>, vector<1x32xf32>
    %104 = arith.maximumf %98, %103 : vector<1x32xf32>
    %c8_i32_32 = arith.constant 8 : i32
    %c1 = arith.constant 1 : index
    %c0_33 = arith.constant 0 : index
    %105 = vector.load %arg8[%c1, %c0_33] : memref<8x32xf32, #tpu.memory_space<vmem>>, vector<1x32xf32>
    tpu.vector_store %arg8[%c1, %c0_33], %104 {strides = array<i32>} : memref<8x32xf32, #tpu.memory_space<vmem>>, vector<1x32xf32>,
    %c8_i32_34 = arith.constant 8 : i32
    %106 = arith.muli %arg0, %c8_i32_34 : i32
    %c2_i32_35 = arith.constant 2 : i32
    %107 = arith.addi %106, %c2_i32_35 : i32
    %c8_i32_36 = arith.constant 8 : i32
    %108 = arith.muli %107, %c8_i32_36 : i32
    %cst_37 = arith.constant 0xFF800000 : f32
    %109 = vector.broadcast %cst_37 : f32 to vector<1x32xf32>
    %c0_i32_38 = arith.constant 0 : i32
    %110 = arith.addi %108, %c0_i32_38 : i32
    %111 = arith.index_cast %110 : i32 to index
    %112 = memref.load %arg1[%111] : memref<64xi32, #tpu.memory_space<smem>>
    %113 = arith.index_cast %112 : i32 to index
    %c0_39 = arith.constant 0 : index
    %114 = vector.load %arg2[%113, %c0_39] : memref<50x32xf32, #tpu.memory_space<vmem>>, vector<1x32xf32>
    %115 = arith.maximumf %109, %114 : vector<1x32xf32>
    %c1_i32_40 = arith.constant 1 : i32
    %116 = arith.addi %108, %c1_i32_40 : i32
    %117 = arith.index_cast %116 : i32 to index
    %118 = memref.load %arg1[%117] : memref<64xi32, #tpu.memory_space<smem>>
    %119 = arith.index_cast %118 : i32 to index
    %c0_41 = arith.constant 0 : index
    %120 = vector.load %arg2[%119, %c0_41] : memref<50x32xf32, #tpu.memory_space<vmem>>, vector<1x32xf32>
    %121 = arith.maximumf %115, %120 : vector<1x32xf32>
    %c2_i32_42 = arith.constant 2 : i32
    %122 = arith.addi %108, %c2_i32_42 : i32
    %123 = arith.index_cast %122 : i32 to index
    %124 = memref.load %arg1[%123] : memref<64xi32, #tpu.memory_space<smem>>
    %125 = arith.index_cast %124 : i32 to index
    %c0_43 = arith.constant 0 : index
    %126 = vector.load %arg2[%125, %c0_43] : memref<50x32xf32, #tpu.memory_space<vmem>>, vector<1x32xf32>
    %127 = arith.maximumf %121, %126 : vector<1x32xf32>
    %c3_i32_44 = arith.constant 3 : i32
    %128 = arith.addi %108, %c3_i32_44 : i32
    %129 = arith.index_cast %128 : i32 to index
    %130 = memref.load %arg1[%129] : memref<64xi32, #tpu.memory_space<smem>>
    %131 = arith.index_cast %130 : i32 to index
    %c0_45 = arith.constant 0 : index
    %132 = vector.load %arg2[%131, %c0_45] : memref<50x32xf32, #tpu.memory_space<vmem>>, vector<1x32xf32>
    %133 = arith.maximumf %127, %132 : vector<1x32xf32>
    %c4_i32_46 = arith.constant 4 : i32
    %134 = arith.addi %108, %c4_i32_46 : i32
    %135 = arith.index_cast %134 : i32 to index
    %136 = memref.load %arg1[%135] : memref<64xi32, #tpu.memory_space<smem>>
    %137 = arith.index_cast %136 : i32 to index
    %c0_47 = arith.constant 0 : index
    %138 = vector.load %arg2[%137, %c0_47] : memref<50x32xf32, #tpu.memory_space<vmem>>, vector<1x32xf32>
    %139 = arith.maximumf %133, %138 : vector<1x32xf32>
    %c5_i32_48 = arith.constant 5 : i32
    %140 = arith.addi %108, %c5_i32_48 : i32
    %141 = arith.index_cast %140 : i32 to index
    %142 = memref.load %arg1[%141] : memref<64xi32, #tpu.memory_space<smem>>
    %143 = arith.index_cast %142 : i32 to index
    %c0_49 = arith.constant 0 : index
    %144 = vector.load %arg2[%143, %c0_49] : memref<50x32xf32, #tpu.memory_space<vmem>>, vector<1x32xf32>
    %145 = arith.maximumf %139, %144 : vector<1x32xf32>
    %c6_i32_50 = arith.constant 6 : i32
    %146 = arith.addi %108, %c6_i32_50 : i32
    %147 = arith.index_cast %146 : i32 to index
    %148 = memref.load %arg1[%147] : memref<64xi32, #tpu.memory_space<smem>>
    %149 = arith.index_cast %148 : i32 to index
    %c0_51 = arith.constant 0 : index
    %150 = vector.load %arg2[%149, %c0_51] : memref<50x32xf32, #tpu.memory_space<vmem>>, vector<1x32xf32>
    %151 = arith.maximumf %145, %150 : vector<1x32xf32>
    %c7_i32_52 = arith.constant 7 : i32
    %152 = arith.addi %108, %c7_i32_52 : i32
    %153 = arith.index_cast %152 : i32 to index
    %154 = memref.load %arg1[%153] : memref<64xi32, #tpu.memory_space<smem>>
    %155 = arith.index_cast %154 : i32 to index
    %c0_53 = arith.constant 0 : index
    %156 = vector.load %arg2[%155, %c0_53] : memref<50x32xf32, #tpu.memory_space<vmem>>, vector<1x32xf32>
    %157 = arith.maximumf %151, %156 : vector<1x32xf32>
    %c8_i32_54 = arith.constant 8 : i32
    %c2 = arith.constant 2 : index
    %c0_55 = arith.constant 0 : index
    %158 = vector.load %arg8[%c2, %c0_55] : memref<8x32xf32, #tpu.memory_space<vmem>>, vector<1x32xf32>
    tpu.vector_store %arg8[%c2, %c0_55], %157 {strides = array<i32>} : memref<8x32xf32, #tpu.memory_space<vmem>>, vector<1x32xf32>,
    %c8_i32_56 = arith.constant 8 : i32
    %159 = arith.muli %arg0, %c8_i32_56 : i32
    %c3_i32_57 = arith.constant 3 : i32
    %160 = arith.addi %159, %c3_i32_57 : i32
    %c8_i32_58 = arith.constant 8 : i32
    %161 = arith.muli %160, %c8_i32_58 : i32
    %cst_59 = arith.constant 0xFF800000 : f32
    %162 = vector.broadcast %cst_59 : f32 to vector<1x32xf32>
    %c0_i32_60 = arith.constant 0 : i32
    %163 = arith.addi %161, %c0_i32_60 : i32
    %164 = arith.index_cast %163 : i32 to index
    %165 = memref.load %arg1[%164] : memref<64xi32, #tpu.memory_space<smem>>
    %166 = arith.index_cast %165 : i32 to index
    %c0_61 = arith.constant 0 : index
    %167 = vector.load %arg2[%166, %c0_61] : memref<50x32xf32, #tpu.memory_space<vmem>>, vector<1x32xf32>
    %168 = arith.maximumf %162, %167 : vector<1x32xf32>
    %c1_i32_62 = arith.constant 1 : i32
    %169 = arith.addi %161, %c1_i32_62 : i32
    %170 = arith.index_cast %169 : i32 to index
    %171 = memref.load %arg1[%170] : memref<64xi32, #tpu.memory_space<smem>>
    %172 = arith.index_cast %171 : i32 to index
    %c0_63 = arith.constant 0 : index
    %173 = vector.load %arg2[%172, %c0_63] : memref<50x32xf32, #tpu.memory_space<vmem>>, vector<1x32xf32>
    %174 = arith.maximumf %168, %173 : vector<1x32xf32>
    %c2_i32_64 = arith.constant 2 : i32
    %175 = arith.addi %161, %c2_i32_64 : i32
    %176 = arith.index_cast %175 : i32 to index
    %177 = memref.load %arg1[%176] : memref<64xi32, #tpu.memory_space<smem>>
    %178 = arith.index_cast %177 : i32 to index
    %c0_65 = arith.constant 0 : index
    %179 = vector.load %arg2[%178, %c0_65] : memref<50x32xf32, #tpu.memory_space<vmem>>, vector<1x32xf32>
    %180 = arith.maximumf %174, %179 : vector<1x32xf32>
    %c3_i32_66 = arith.constant 3 : i32
    %181 = arith.addi %161, %c3_i32_66 : i32
    %182 = arith.index_cast %181 : i32 to index
    %183 = memref.load %arg1[%182] : memref<64xi32, #tpu.memory_space<smem>>
    %184 = arith.index_cast %183 : i32 to index
    %c0_67 = arith.constant 0 : index
    %185 = vector.load %arg2[%184, %c0_67] : memref<50x32xf32, #tpu.memory_space<vmem>>, vector<1x32xf32>
    %186 = arith.maximumf %180, %185 : vector<1x32xf32>
    %c4_i32_68 = arith.constant 4 : i32
    %187 = arith.addi %161, %c4_i32_68 : i32
    %188 = arith.index_cast %187 : i32 to index
    %189 = memref.load %arg1[%188] : memref<64xi32, #tpu.memory_space<smem>>
    %190 = arith.index_cast %189 : i32 to index
    %c0_69 = arith.constant 0 : index
    %191 = vector.load %arg2[%190, %c0_69] : memref<50x32xf32, #tpu.memory_space<vmem>>, vector<1x32xf32>
    %192 = arith.maximumf %186, %191 : vector<1x32xf32>
    %c5_i32_70 = arith.constant 5 : i32
    %193 = arith.addi %161, %c5_i32_70 : i32
    %194 = arith.index_cast %193 : i32 to index
    %195 = memref.load %arg1[%194] : memref<64xi32, #tpu.memory_space<smem>>
    %196 = arith.index_cast %195 : i32 to index
    %c0_71 = arith.constant 0 : index
    %197 = vector.load %arg2[%196, %c0_71] : memref<50x32xf32, #tpu.memory_space<vmem>>, vector<1x32xf32>
    %198 = arith.maximumf %192, %197 : vector<1x32xf32>
    %c6_i32_72 = arith.constant 6 : i32
    %199 = arith.addi %161, %c6_i32_72 : i32
    %200 = arith.index_cast %199 : i32 to index
    %201 = memref.load %arg1[%200] : memref<64xi32, #tpu.memory_space<smem>>
    %202 = arith.index_cast %201 : i32 to index
    %c0_73 = arith.constant 0 : index
    %203 = vector.load %arg2[%202, %c0_73] : memref<50x32xf32, #tpu.memory_space<vmem>>, vector<1x32xf32>
    %204 = arith.maximumf %198, %203 : vector<1x32xf32>
    %c7_i32_74 = arith.constant 7 : i32
    %205 = arith.addi %161, %c7_i32_74 : i32
    %206 = arith.index_cast %205 : i32 to index
    %207 = memref.load %arg1[%206] : memref<64xi32, #tpu.memory_space<smem>>
    %208 = arith.index_cast %207 : i32 to index
    %c0_75 = arith.constant 0 : index
    %209 = vector.load %arg2[%208, %c0_75] : memref<50x32xf32, #tpu.memory_space<vmem>>, vector<1x32xf32>
    %210 = arith.maximumf %204, %209 : vector<1x32xf32>
    %c8_i32_76 = arith.constant 8 : i32
    %c3 = arith.constant 3 : index
    %c0_77 = arith.constant 0 : index
    %211 = vector.load %arg8[%c3, %c0_77] : memref<8x32xf32, #tpu.memory_space<vmem>>, vector<1x32xf32>
    tpu.vector_store %arg8[%c3, %c0_77], %210 {strides = array<i32>} : memref<8x32xf32, #tpu.memory_space<vmem>>, vector<1x32xf32>,
    %c8_i32_78 = arith.constant 8 : i32
    %212 = arith.muli %arg0, %c8_i32_78 : i32
    %c4_i32_79 = arith.constant 4 : i32
    %213 = arith.addi %212, %c4_i32_79 : i32
    %c8_i32_80 = arith.constant 8 : i32
    %214 = arith.muli %213, %c8_i32_80 : i32
    %cst_81 = arith.constant 0xFF800000 : f32
    %215 = vector.broadcast %cst_81 : f32 to vector<1x32xf32>
    %c0_i32_82 = arith.constant 0 : i32
    %216 = arith.addi %214, %c0_i32_82 : i32
    %217 = arith.index_cast %216 : i32 to index
    %218 = memref.load %arg1[%217] : memref<64xi32, #tpu.memory_space<smem>>
    %219 = arith.index_cast %218 : i32 to index
    %c0_83 = arith.constant 0 : index
    %220 = vector.load %arg2[%219, %c0_83] : memref<50x32xf32, #tpu.memory_space<vmem>>, vector<1x32xf32>
    %221 = arith.maximumf %215, %220 : vector<1x32xf32>
    %c1_i32_84 = arith.constant 1 : i32
    %222 = arith.addi %214, %c1_i32_84 : i32
    %223 = arith.index_cast %222 : i32 to index
    %224 = memref.load %arg1[%223] : memref<64xi32, #tpu.memory_space<smem>>
    %225 = arith.index_cast %224 : i32 to index
    %c0_85 = arith.constant 0 : index
    %226 = vector.load %arg2[%225, %c0_85] : memref<50x32xf32, #tpu.memory_space<vmem>>, vector<1x32xf32>
    %227 = arith.maximumf %221, %226 : vector<1x32xf32>
    %c2_i32_86 = arith.constant 2 : i32
    %228 = arith.addi %214, %c2_i32_86 : i32
    %229 = arith.index_cast %228 : i32 to index
    %230 = memref.load %arg1[%229] : memref<64xi32, #tpu.memory_space<smem>>
    %231 = arith.index_cast %230 : i32 to index
    %c0_87 = arith.constant 0 : index
    %232 = vector.load %arg2[%231, %c0_87] : memref<50x32xf32, #tpu.memory_space<vmem>>, vector<1x32xf32>
    %233 = arith.maximumf %227, %232 : vector<1x32xf32>
    %c3_i32_88 = arith.constant 3 : i32
    %234 = arith.addi %214, %c3_i32_88 : i32
    %235 = arith.index_cast %234 : i32 to index
    %236 = memref.load %arg1[%235] : memref<64xi32, #tpu.memory_space<smem>>
    %237 = arith.index_cast %236 : i32 to index
    %c0_89 = arith.constant 0 : index
    %238 = vector.load %arg2[%237, %c0_89] : memref<50x32xf32, #tpu.memory_space<vmem>>, vector<1x32xf32>
    %239 = arith.maximumf %233, %238 : vector<1x32xf32>
    %c4_i32_90 = arith.constant 4 : i32
    %240 = arith.addi %214, %c4_i32_90 : i32
    %241 = arith.index_cast %240 : i32 to index
    %242 = memref.load %arg1[%241] : memref<64xi32, #tpu.memory_space<smem>>
    %243 = arith.index_cast %242 : i32 to index
    %c0_91 = arith.constant 0 : index
    %244 = vector.load %arg2[%243, %c0_91] : memref<50x32xf32, #tpu.memory_space<vmem>>, vector<1x32xf32>
    %245 = arith.maximumf %239, %244 : vector<1x32xf32>
    %c5_i32_92 = arith.constant 5 : i32
    %246 = arith.addi %214, %c5_i32_92 : i32
    %247 = arith.index_cast %246 : i32 to index
    %248 = memref.load %arg1[%247] : memref<64xi32, #tpu.memory_space<smem>>
    %249 = arith.index_cast %248 : i32 to index
    %c0_93 = arith.constant 0 : index
    %250 = vector.load %arg2[%249, %c0_93] : memref<50x32xf32, #tpu.memory_space<vmem>>, vector<1x32xf32>
    %251 = arith.maximumf %245, %250 : vector<1x32xf32>
    %c6_i32_94 = arith.constant 6 : i32
    %252 = arith.addi %214, %c6_i32_94 : i32
    %253 = arith.index_cast %252 : i32 to index
    %254 = memref.load %arg1[%253] : memref<64xi32, #tpu.memory_space<smem>>
    %255 = arith.index_cast %254 : i32 to index
    %c0_95 = arith.constant 0 : index
    %256 = vector.load %arg2[%255, %c0_95] : memref<50x32xf32, #tpu.memory_space<vmem>>, vector<1x32xf32>
    %257 = arith.maximumf %251, %256 : vector<1x32xf32>
    %c7_i32_96 = arith.constant 7 : i32
    %258 = arith.addi %214, %c7_i32_96 : i32
    %259 = arith.index_cast %258 : i32 to index
    %260 = memref.load %arg1[%259] : memref<64xi32, #tpu.memory_space<smem>>
    %261 = arith.index_cast %260 : i32 to index
    %c0_97 = arith.constant 0 : index
    %262 = vector.load %arg2[%261, %c0_97] : memref<50x32xf32, #tpu.memory_space<vmem>>, vector<1x32xf32>
    %263 = arith.maximumf %257, %262 : vector<1x32xf32>
    %c8_i32_98 = arith.constant 8 : i32
    %c4 = arith.constant 4 : index
    %c0_99 = arith.constant 0 : index
    %264 = vector.load %arg8[%c4, %c0_99] : memref<8x32xf32, #tpu.memory_space<vmem>>, vector<1x32xf32>
    tpu.vector_store %arg8[%c4, %c0_99], %263 {strides = array<i32>} : memref<8x32xf32, #tpu.memory_space<vmem>>, vector<1x32xf32>,
    %c8_i32_100 = arith.constant 8 : i32
    %265 = arith.muli %arg0, %c8_i32_100 : i32
    %c5_i32_101 = arith.constant 5 : i32
    %266 = arith.addi %265, %c5_i32_101 : i32
    %c8_i32_102 = arith.constant 8 : i32
    %267 = arith.muli %266, %c8_i32_102 : i32
    %cst_103 = arith.constant 0xFF800000 : f32
    %268 = vector.broadcast %cst_103 : f32 to vector<1x32xf32>
    %c0_i32_104 = arith.constant 0 : i32
    %269 = arith.addi %267, %c0_i32_104 : i32
    %270 = arith.index_cast %269 : i32 to index
    %271 = memref.load %arg1[%270] : memref<64xi32, #tpu.memory_space<smem>>
    %272 = arith.index_cast %271 : i32 to index
    %c0_105 = arith.constant 0 : index
    %273 = vector.load %arg2[%272, %c0_105] : memref<50x32xf32, #tpu.memory_space<vmem>>, vector<1x32xf32>
    %274 = arith.maximumf %268, %273 : vector<1x32xf32>
    %c1_i32_106 = arith.constant 1 : i32
    %275 = arith.addi %267, %c1_i32_106 : i32
    %276 = arith.index_cast %275 : i32 to index
    %277 = memref.load %arg1[%276] : memref<64xi32, #tpu.memory_space<smem>>
    %278 = arith.index_cast %277 : i32 to index
    %c0_107 = arith.constant 0 : index
    %279 = vector.load %arg2[%278, %c0_107] : memref<50x32xf32, #tpu.memory_space<vmem>>, vector<1x32xf32>
    %280 = arith.maximumf %274, %279 : vector<1x32xf32>
    %c2_i32_108 = arith.constant 2 : i32
    %281 = arith.addi %267, %c2_i32_108 : i32
    %282 = arith.index_cast %281 : i32 to index
    %283 = memref.load %arg1[%282] : memref<64xi32, #tpu.memory_space<smem>>
    %284 = arith.index_cast %283 : i32 to index
    %c0_109 = arith.constant 0 : index
    %285 = vector.load %arg2[%284, %c0_109] : memref<50x32xf32, #tpu.memory_space<vmem>>, vector<1x32xf32>
    %286 = arith.maximumf %280, %285 : vector<1x32xf32>
    %c3_i32_110 = arith.constant 3 : i32
    %287 = arith.addi %267, %c3_i32_110 : i32
    %288 = arith.index_cast %287 : i32 to index
    %289 = memref.load %arg1[%288] : memref<64xi32, #tpu.memory_space<smem>>
    %290 = arith.index_cast %289 : i32 to index
    %c0_111 = arith.constant 0 : index
    %291 = vector.load %arg2[%290, %c0_111] : memref<50x32xf32, #tpu.memory_space<vmem>>, vector<1x32xf32>
    %292 = arith.maximumf %286, %291 : vector<1x32xf32>
    %c4_i32_112 = arith.constant 4 : i32
    %293 = arith.addi %267, %c4_i32_112 : i32
    %294 = arith.index_cast %293 : i32 to index
    %295 = memref.load %arg1[%294] : memref<64xi32, #tpu.memory_space<smem>>
    %296 = arith.index_cast %295 : i32 to index
    %c0_113 = arith.constant 0 : index
    %297 = vector.load %arg2[%296, %c0_113] : memref<50x32xf32, #tpu.memory_space<vmem>>, vector<1x32xf32>
    %298 = arith.maximumf %292, %297 : vector<1x32xf32>
    %c5_i32_114 = arith.constant 5 : i32
    %299 = arith.addi %267, %c5_i32_114 : i32
    %300 = arith.index_cast %299 : i32 to index
    %301 = memref.load %arg1[%300] : memref<64xi32, #tpu.memory_space<smem>>
    %302 = arith.index_cast %301 : i32 to index
    %c0_115 = arith.constant 0 : index
    %303 = vector.load %arg2[%302, %c0_115] : memref<50x32xf32, #tpu.memory_space<vmem>>, vector<1x32xf32>
    %304 = arith.maximumf %298, %303 : vector<1x32xf32>
    %c6_i32_116 = arith.constant 6 : i32
    %305 = arith.addi %267, %c6_i32_116 : i32
    %306 = arith.index_cast %305 : i32 to index
    %307 = memref.load %arg1[%306] : memref<64xi32, #tpu.memory_space<smem>>
    %308 = arith.index_cast %307 : i32 to index
    %c0_117 = arith.constant 0 : index
    %309 = vector.load %arg2[%308, %c0_117] : memref<50x32xf32, #tpu.memory_space<vmem>>, vector<1x32xf32>
    %310 = arith.maximumf %304, %309 : vector<1x32xf32>
    %c7_i32_118 = arith.constant 7 : i32
    %311 = arith.addi %267, %c7_i32_118 : i32
    %312 = arith.index_cast %311 : i32 to index
    %313 = memref.load %arg1[%312] : memref<64xi32, #tpu.memory_space<smem>>
    %314 = arith.index_cast %313 : i32 to index
    %c0_119 = arith.constant 0 : index
    %315 = vector.load %arg2[%314, %c0_119] : memref<50x32xf32, #tpu.memory_space<vmem>>, vector<1x32xf32>
    %316 = arith.maximumf %310, %315 : vector<1x32xf32>
    %c8_i32_120 = arith.constant 8 : i32
    %c5 = arith.constant 5 : index
    %c0_121 = arith.constant 0 : index
    %317 = vector.load %arg8[%c5, %c0_121] : memref<8x32xf32, #tpu.memory_space<vmem>>, vector<1x32xf32>
    tpu.vector_store %arg8[%c5, %c0_121], %316 {strides = array<i32>} : memref<8x32xf32, #tpu.memory_space<vmem>>, vector<1x32xf32>,
    %c8_i32_122 = arith.constant 8 : i32
    %318 = arith.muli %arg0, %c8_i32_122 : i32
    %c6_i32_123 = arith.constant 6 : i32
    %319 = arith.addi %318, %c6_i32_123 : i32
    %c8_i32_124 = arith.constant 8 : i32
    %320 = arith.muli %319, %c8_i32_124 : i32
    %cst_125 = arith.constant 0xFF800000 : f32
    %321 = vector.broadcast %cst_125 : f32 to vector<1x32xf32>
    %c0_i32_126 = arith.constant 0 : i32
    %322 = arith.addi %320, %c0_i32_126 : i32
    %323 = arith.index_cast %322 : i32 to index
    %324 = memref.load %arg1[%323] : memref<64xi32, #tpu.memory_space<smem>>
    %325 = arith.index_cast %324 : i32 to index
    %c0_127 = arith.constant 0 : index
    %326 = vector.load %arg2[%325, %c0_127] : memref<50x32xf32, #tpu.memory_space<vmem>>, vector<1x32xf32>
    %327 = arith.maximumf %321, %326 : vector<1x32xf32>
    %c1_i32_128 = arith.constant 1 : i32
    %328 = arith.addi %320, %c1_i32_128 : i32
    %329 = arith.index_cast %328 : i32 to index
    %330 = memref.load %arg1[%329] : memref<64xi32, #tpu.memory_space<smem>>
    %331 = arith.index_cast %330 : i32 to index
    %c0_129 = arith.constant 0 : index
    %332 = vector.load %arg2[%331, %c0_129] : memref<50x32xf32, #tpu.memory_space<vmem>>, vector<1x32xf32>
    %333 = arith.maximumf %327, %332 : vector<1x32xf32>
    %c2_i32_130 = arith.constant 2 : i32
    %334 = arith.addi %320, %c2_i32_130 : i32
    %335 = arith.index_cast %334 : i32 to index
    %336 = memref.load %arg1[%335] : memref<64xi32, #tpu.memory_space<smem>>
    %337 = arith.index_cast %336 : i32 to index
    %c0_131 = arith.constant 0 : index
    %338 = vector.load %arg2[%337, %c0_131] : memref<50x32xf32, #tpu.memory_space<vmem>>, vector<1x32xf32>
    %339 = arith.maximumf %333, %338 : vector<1x32xf32>
    %c3_i32_132 = arith.constant 3 : i32
    %340 = arith.addi %320, %c3_i32_132 : i32
    %341 = arith.index_cast %340 : i32 to index
    %342 = memref.load %arg1[%341] : memref<64xi32, #tpu.memory_space<smem>>
    %343 = arith.index_cast %342 : i32 to index
    %c0_133 = arith.constant 0 : index
    %344 = vector.load %arg2[%343, %c0_133] : memref<50x32xf32, #tpu.memory_space<vmem>>, vector<1x32xf32>
    %345 = arith.maximumf %339, %344 : vector<1x32xf32>
    %c4_i32_134 = arith.constant 4 : i32
    %346 = arith.addi %320, %c4_i32_134 : i32
    %347 = arith.index_cast %346 : i32 to index
    %348 = memref.load %arg1[%347] : memref<64xi32, #tpu.memory_space<smem>>
    %349 = arith.index_cast %348 : i32 to index
    %c0_135 = arith.constant 0 : index
    %350 = vector.load %arg2[%349, %c0_135] : memref<50x32xf32, #tpu.memory_space<vmem>>, vector<1x32xf32>
    %351 = arith.maximumf %345, %350 : vector<1x32xf32>
    %c5_i32_136 = arith.constant 5 : i32
    %352 = arith.addi %320, %c5_i32_136 : i32
    %353 = arith.index_cast %352 : i32 to index
    %354 = memref.load %arg1[%353] : memref<64xi32, #tpu.memory_space<smem>>
    %355 = arith.index_cast %354 : i32 to index
    %c0_137 = arith.constant 0 : index
    %356 = vector.load %arg2[%355, %c0_137] : memref<50x32xf32, #tpu.memory_space<vmem>>, vector<1x32xf32>
    %357 = arith.maximumf %351, %356 : vector<1x32xf32>
    %c6_i32_138 = arith.constant 6 : i32
    %358 = arith.addi %320, %c6_i32_138 : i32
    %359 = arith.index_cast %358 : i32 to index
    %360 = memref.load %arg1[%359] : memref<64xi32, #tpu.memory_space<smem>>
    %361 = arith.index_cast %360 : i32 to index
    %c0_139 = arith.constant 0 : index
    %362 = vector.load %arg2[%361, %c0_139] : memref<50x32xf32, #tpu.memory_space<vmem>>, vector<1x32xf32>
    %363 = arith.maximumf %357, %362 : vector<1x32xf32>
    %c7_i32_140 = arith.constant 7 : i32
    %364 = arith.addi %320, %c7_i32_140 : i32
    %365 = arith.index_cast %364 : i32 to index
    %366 = memref.load %arg1[%365] : memref<64xi32, #tpu.memory_space<smem>>
    %367 = arith.index_cast %366 : i32 to index
    %c0_141 = arith.constant 0 : index
    %368 = vector.load %arg2[%367, %c0_141] : memref<50x32xf32, #tpu.memory_space<vmem>>, vector<1x32xf32>
    %369 = arith.maximumf %363, %368 : vector<1x32xf32>
    %c8_i32_142 = arith.constant 8 : i32
    %c6 = arith.constant 6 : index
    %c0_143 = arith.constant 0 : index
    %370 = vector.load %arg8[%c6, %c0_143] : memref<8x32xf32, #tpu.memory_space<vmem>>, vector<1x32xf32>
    tpu.vector_store %arg8[%c6, %c0_143], %369 {strides = array<i32>} : memref<8x32xf32, #tpu.memory_space<vmem>>, vector<1x32xf32>,
    %c8_i32_144 = arith.constant 8 : i32
    %371 = arith.muli %arg0, %c8_i32_144 : i32
    %c7_i32_145 = arith.constant 7 : i32
    %372 = arith.addi %371, %c7_i32_145 : i32
    %c8_i32_146 = arith.constant 8 : i32
    %373 = arith.muli %372, %c8_i32_146 : i32
    %cst_147 = arith.constant 0xFF800000 : f32
    %374 = vector.broadcast %cst_147 : f32 to vector<1x32xf32>
    %c0_i32_148 = arith.constant 0 : i32
    %375 = arith.addi %373, %c0_i32_148 : i32
    %376 = arith.index_cast %375 : i32 to index
    %377 = memref.load %arg1[%376] : memref<64xi32, #tpu.memory_space<smem>>
    %378 = arith.index_cast %377 : i32 to index
    %c0_149 = arith.constant 0 : index
    %379 = vector.load %arg2[%378, %c0_149] : memref<50x32xf32, #tpu.memory_space<vmem>>, vector<1x32xf32>
    %380 = arith.maximumf %374, %379 : vector<1x32xf32>
    %c1_i32_150 = arith.constant 1 : i32
    %381 = arith.addi %373, %c1_i32_150 : i32
    %382 = arith.index_cast %381 : i32 to index
    %383 = memref.load %arg1[%382] : memref<64xi32, #tpu.memory_space<smem>>
    %384 = arith.index_cast %383 : i32 to index
    %c0_151 = arith.constant 0 : index
    %385 = vector.load %arg2[%384, %c0_151] : memref<50x32xf32, #tpu.memory_space<vmem>>, vector<1x32xf32>
    %386 = arith.maximumf %380, %385 : vector<1x32xf32>
    %c2_i32_152 = arith.constant 2 : i32
    %387 = arith.addi %373, %c2_i32_152 : i32
    %388 = arith.index_cast %387 : i32 to index
    %389 = memref.load %arg1[%388] : memref<64xi32, #tpu.memory_space<smem>>
    %390 = arith.index_cast %389 : i32 to index
    %c0_153 = arith.constant 0 : index
    %391 = vector.load %arg2[%390, %c0_153] : memref<50x32xf32, #tpu.memory_space<vmem>>, vector<1x32xf32>
    %392 = arith.maximumf %386, %391 : vector<1x32xf32>
    %c3_i32_154 = arith.constant 3 : i32
    %393 = arith.addi %373, %c3_i32_154 : i32
    %394 = arith.index_cast %393 : i32 to index
    %395 = memref.load %arg1[%394] : memref<64xi32, #tpu.memory_space<smem>>
    %396 = arith.index_cast %395 : i32 to index
    %c0_155 = arith.constant 0 : index
    %397 = vector.load %arg2[%396, %c0_155] : memref<50x32xf32, #tpu.memory_space<vmem>>, vector<1x32xf32>
    %398 = arith.maximumf %392, %397 : vector<1x32xf32>
    %c4_i32_156 = arith.constant 4 : i32
    %399 = arith.addi %373, %c4_i32_156 : i32
    %400 = arith.index_cast %399 : i32 to index
    %401 = memref.load %arg1[%400] : memref<64xi32, #tpu.memory_space<smem>>
    %402 = arith.index_cast %401 : i32 to index
    %c0_157 = arith.constant 0 : index
    %403 = vector.load %arg2[%402, %c0_157] : memref<50x32xf32, #tpu.memory_space<vmem>>, vector<1x32xf32>
    %404 = arith.maximumf %398, %403 : vector<1x32xf32>
    %c5_i32_158 = arith.constant 5 : i32
    %405 = arith.addi %373, %c5_i32_158 : i32
    %406 = arith.index_cast %405 : i32 to index
    %407 = memref.load %arg1[%406] : memref<64xi32, #tpu.memory_space<smem>>
    %408 = arith.index_cast %407 : i32 to index
    %c0_159 = arith.constant 0 : index
    %409 = vector.load %arg2[%408, %c0_159] : memref<50x32xf32, #tpu.memory_space<vmem>>, vector<1x32xf32>
    %410 = arith.maximumf %404, %409 : vector<1x32xf32>
    %c6_i32_160 = arith.constant 6 : i32
    %411 = arith.addi %373, %c6_i32_160 : i32
    %412 = arith.index_cast %411 : i32 to index
    %413 = memref.load %arg1[%412] : memref<64xi32, #tpu.memory_space<smem>>
    %414 = arith.index_cast %413 : i32 to index
    %c0_161 = arith.constant 0 : index
    %415 = vector.load %arg2[%414, %c0_161] : memref<50x32xf32, #tpu.memory_space<vmem>>, vector<1x32xf32>
    %416 = arith.maximumf %410, %415 : vector<1x32xf32>
    %c7_i32_162 = arith.constant 7 : i32
    %417 = arith.addi %373, %c7_i32_162 : i32
    %418 = arith.index_cast %417 : i32 to index
    %419 = memref.load %arg1[%418] : memref<64xi32, #tpu.memory_space<smem>>
    %420 = arith.index_cast %419 : i32 to index
    %c0_163 = arith.constant 0 : index
    %421 = vector.load %arg2[%420, %c0_163] : memref<50x32xf32, #tpu.memory_space<vmem>>, vector<1x32xf32>
    %422 = arith.maximumf %416, %421 : vector<1x32xf32>
    %c8_i32_164 = arith.constant 8 : i32
    %c7 = arith.constant 7 : index
    %c0_165 = arith.constant 0 : index
    %423 = vector.load %arg8[%c7, %c0_165] : memref<8x32xf32, #tpu.memory_space<vmem>>, vector<1x32xf32>
    tpu.vector_store %arg8[%c7, %c0_165], %422 {strides = array<i32>} : memref<8x32xf32, #tpu.memory_space<vmem>>, vector<1x32xf32>,
    %c0_166 = arith.constant 0 : index
    %c0_167 = arith.constant 0 : index
    %424 = vector.load %arg8[%c0_166, %c0_167] : memref<8x32xf32, #tpu.memory_space<vmem>>, vector<8x32xf32>
    %425 = math.tanh %424 : vector<8x32xf32>
    %cst_168 = arith.constant 0.000000e+00 : f32
    %426 = vector.broadcast %cst_168 : f32 to vector<8x32xf32>
    %427 = arith.maximumf %425, %426 : vector<8x32xf32>
    %c0_169 = arith.constant 0 : index
    %c0_170 = arith.constant 0 : index
    %428 = vector.load %arg3[%c0_169, %c0_170] : memref<32x128xf32, #tpu.memory_space<vmem>>, vector<32x128xf32>
    %cst_171 = arith.constant dense<0.000000e+00> : vector<8x128xf32>
    %429 = tpu.matmul %427, %428, %cst_171 {dimension_numbers = #tpu.dot_dimension_numbers<[1], [0], [0], [1], [0, 0, 1, 1], [], []>, precision = #tpu.contract_precision<fp32>} : vector<8x32xf32>, vector<32x128xf32>, vector<8x128xf32> -> vector<8x128xf32>
    %c0_172 = arith.constant 0 : index
    %c0_173 = arith.constant 0 : index
    %430 = vector.load %arg4[%c0_172, %c0_173] : memref<1x128xf32, #tpu.memory_space<vmem>>, vector<1x128xf32>
    %431 = vector.broadcast %430 : vector<1x128xf32> to vector<8x128xf32>
    %432 = arith.addf %429, %431 : vector<8x128xf32>
    %cst_174 = arith.constant 0.000000e+00 : f32
    %433 = vector.broadcast %cst_174 : f32 to vector<8x128xf32>
    %434 = arith.maximumf %432, %433 : vector<8x128xf32>
    %c0_175 = arith.constant 0 : index
    %c0_176 = arith.constant 0 : index
    %435 = vector.load %arg5[%c0_175, %c0_176] : memref<128x128xf32, #tpu.memory_space<vmem>>, vector<128x128xf32>
    %cst_177 = arith.constant dense<0.000000e+00> : vector<8x128xf32>
    %436 = tpu.matmul %434, %435, %cst_177 {dimension_numbers = #tpu.dot_dimension_numbers<[1], [0], [0], [1], [0, 0, 1, 1], [], []>, precision = #tpu.contract_precision<fp32>} : vector<8x128xf32>, vector<128x128xf32>, vector<8x128xf32> -> vector<8x128xf32>
    %c0_178 = arith.constant 0 : index
    %c0_179 = arith.constant 0 : index
    %437 = vector.load %arg6[%c0_178, %c0_179] : memref<1x128xf32, #tpu.memory_space<vmem>>, vector<1x128xf32>
    %438 = vector.broadcast %437 : vector<1x128xf32> to vector<8x128xf32>
    %439 = arith.addf %436, %438 : vector<8x128xf32>
    %c0_180 = arith.constant 0 : index
    %c0_181 = arith.constant 0 : index
    %440 = vector.load %arg7[%c0_180, %c0_181] : memref<8x128xf32, #tpu.memory_space<vmem>>, vector<8x128xf32>
    tpu.vector_store %arg7[%c0_180, %c0_181], %439 {strides = array<i32>} : memref<8x128xf32, #tpu.memory_space<vmem>>, vector<8x128xf32>,
    return
  }
  func.func @transform_0(%arg0: i32, %arg1: memref<64xi32, #tpu.memory_space<smem>>) -> (i32, i32) {
    %c0_i32 = arith.constant 0 : i32
    %c0_i32_0 = arith.constant 0 : i32
    %c0_i32_1 = arith.constant 0 : i32
    return %c0_i32, %c0_i32_0 : i32, i32
  }
  func.func @transform_1(%arg0: i32, %arg1: memref<64xi32, #tpu.memory_space<smem>>) -> (i32, i32) {
    %c0_i32 = arith.constant 0 : i32
    %c0_i32_0 = arith.constant 0 : i32
    %c0_i32_1 = arith.constant 0 : i32
    return %c0_i32, %c0_i32_0 : i32, i32
  }
  func.func @transform_2(%arg0: i32, %arg1: memref<64xi32, #tpu.memory_space<smem>>) -> (i32, i32) {
    %c0_i32 = arith.constant 0 : i32
    %c0_i32_0 = arith.constant 0 : i32
    %c0_i32_1 = arith.constant 0 : i32
    return %c0_i32, %c0_i32_0 : i32, i32
  }
  func.func @transform_3(%arg0: i32, %arg1: memref<64xi32, #tpu.memory_space<smem>>) -> (i32, i32) {
    %c0_i32 = arith.constant 0 : i32
    %c0_i32_0 = arith.constant 0 : i32
    %c0_i32_1 = arith.constant 0 : i32
    return %c0_i32, %c0_i32_0 : i32, i32
  }
  func.func @transform_4(%arg0: i32, %arg1: memref<64xi32, #tpu.memory_space<smem>>) -> (i32, i32) {
    %c0_i32 = arith.constant 0 : i32
    %c0_i32_0 = arith.constant 0 : i32
    %c0_i32_1 = arith.constant 0 : i32
    return %c0_i32, %c0_i32_0 : i32, i32
  }
  func.func @transform_5(%arg0: i32, %arg1: memref<64xi32, #tpu.memory_space<smem>>) -> (i32, i32) {
    %c0_i32 = arith.constant 0 : i32
    %c0_i32_0 = arith.constant 0 : i32
    return %arg0, %c0_i32 : i32, i32
  }
}

</mosaic_0001>

<bundles_post_ra>
// kernel: tpu_custom_call.1
= control target key start
LH: loop header
LB: loop body
LE: loop exit
PB: predicated region body
PF: predicated region fallthrough
CT: control target
= control target key end

     0   :  { %s3143_s0 = inlined_call_operand.vmem [shape: s32[64], index: 0, kind: input, shape index: {}]   ;;  %s3144_s1 = inlined_call_operand.vmem [shape: f32[50,32], index: 1, kind: input, shape index: {}]   ;;  %s3145_s2 = inlined_call_operand.vmem [shape: f32[32,128], index: 2, kind: input, shape index: {}]   ;;  %s3146_s3 = inlined_call_operand.vmem [shape: f32[1,128], index: 3, kind: input, shape index: {}]   ;;  %s3147_s4 = inlined_call_operand.hbm [shape: f32[128,128], index: 4, kind: input, shape index: {}]   ;;  %s3148_s5 = inlined_call_operand.vmem [shape: f32[1,128], index: 5, kind: input, shape index: {}]   ;;  %s3149_s6 = inlined_call_operand.hbm [shape: f32[8,128], index: 6, kind: output, shape index: {}]  }
   0x1   :  { %s11_s23 = sshll.u32 %s3143_s0, 4  ;;  %s12_s23 = int_to_ptr.vmem [resolvable:$true] %s11_s23 }
   0x2   :  { %s2303_s24 = scalar_lea.vmem %s12_s23, 16  ;;  %p2308_p1 = scmp.lt.s32.totalorder %s12_s23, %s12_s23 }
   0x3   :  { %p2304_p0 = scmp.ne.s32.totalorder %s12_s23, %s2303_s24  ;;  %p2309_p2 = scmp.lt.s32.totalorder %s2303_s24, %s2303_s24 }
   0x5   :  { %p2310_p3 = por %p2309_p2, %p2308_p1 }
   0x7   :  { %p2311_p4 = pnand %p2310_p3, %p2304_p0 }
   0x9   :  { %2314 = shalt.err (!%p2311_p4)  }
   0xa   :  { %s2365_s25 = smov [#allocation4]  }
   0xb   :  { %14 = dma.vmem_to_smem %s12_s23, 16, %s2365_s25, [#allocation3] }
   0xc   :  { %2359 = dma.done.wait [#allocation3], 16 }
   0xd   :  { %2360 = vsyncadd [#allocation3], 4294967280 }
   0xe   :  { %16 = sfence }
   0xf   :  { %17 = vsyncpa [#allocation6], 0 }
  0x10   :  { %18 = vsyncpa [#allocation7], 0  ;;  %s2366_s26 = smov [#allocation5]   ;;  %s2315_s29 = scalar_lea.hbm %s3147_s4, 2048 }
  0x11   :  { %s30_s27 = sshll.u32 %s2366_s26, 4  ;;  %p2316_p5 = scmp.ne.s32.totalorder %s3147_s4, %s2315_s29  ;;  %s31_s27 = int_to_ptr.vmem [resolvable:$true] %s30_s27 }
  0x12   :  { %p2319_p6 = scmp.lt.u32.totalorder %s2315_s29, %s3147_s4 }
  0x14   :  { %p2321_p7 = pnand %p2319_p6, %p2316_p5 }
  0x16   :  { %2324 = shalt.err (!%p2321_p7)
}
  0x17   :  { %s2325_s10 = scalar_lea.vmem %s31_s27, 2048  ;;  %p2330_p9 = scmp.lt.s32.totalorder %s31_s27, %s31_s27 }
  0x18   :  { %p2326_p8 = scmp.ne.s32.totalorder %s31_s27, %s2325_s10  ;;  %p2331_p10 = scmp.lt.s32.totalorder %s2325_s10, %s2325_s10 }
  0x1a   :  { %p2332_p11 = por %p2331_p10, %p2330_p9 }
  0x1c   :  { %p2333_p12 = pnand %p2332_p11, %p2326_p8 }
  0x1e   :  { %2336 = shalt.err (!%p2333_p12)
}
  0x1f   :  { %s2367_s11 = smov 128   ;;  %s2368_s12 = smov 8  }
  0x20   :  { %36 = dma.hbm_to_vmem [thread:$0]  %s3147_s4, 2048, %s31_s27, [#allocation6], %s2367_s11, %s2367_s11, %s2368_s12  }
  0x21   :  { %2361 = dma.done.wait [#allocation6], 2048  }
  0x22   :  { %2362 = vsyncadd [#allocation6], 4294965248  ;;  %v2369_v0 = vmov 0.0|0.0   ;;  %vm2370_vm0 = vmmov 0   ;;  %v2371_v1 = vmov 0.0   ;;  %s43_s15 = sld [smem:[#allocation4]] }
  0x23   :  { %2092 = vmatprep.subr.bf16.mxu0 %v2369_v0  ;;  %1824 = vmatprep.mubr.msk.f32.mxu0 %vm2370_vm0, %v2371_v1  ;;  %s1619_s16 = sld [smem:[#allocation4 + $0x1]]  ;;  %s2426_s17 = sld [smem:[#allocation4 + $0x2]]  ;;  %v374_v2 = vld [vmem:[%s3145_s2] sm:$0xff]  ;;  %v375_v3 = vld [vmem:[%s3145_s2 + $0x8] sm:$0xff]  ;;  %v376_v4 = vld [vmem:[%s3145_s2 + $0x10] sm:$0xff]  ;;  %vm81_vm1 = vcmask 253952  }
  0x24   :  { %s2428_s18 = sld [smem:[#allocation4 + $0x3]]  ;;  %2176 = vmatprep.subr.bf16.mxu1 %v2369_v0  ;;  %1984 = vmatprep.mubr.msk.f32.mxu1 %vm2370_vm0, %v2371_v1  ;;  %s2433_s4 = sld [smem:[#allocation4 + $0x4]]  ;;  %v390_v5 = vand.u32 4294901760, %v374_v2  ;;  %v393_v6 = vand.u32 4294901760, %v375_v3  ;;  %v377_v7 = vld [vmem:[%s3145_s2 + $0x18] sm:$0xff]  ;;  %v396_v8 = vand.u32 4294901760, %v376_v4 }
  0x25   :  { %s2435_s19 = sld [smem:[#allocation4 + $0x5]]  ;;  %s2437_s20 = sld [smem:[#allocation4 + $0x6]]  ;;  %v399_v10 = vand.u32 4294901760, %v377_v7  ;;  %v875_v58 = vld [vmem:[#allocation5] sm:$0xff]  ;;  %v876_v61 = vld [vmem:[#allocation5 + $0x8] sm:$0xff]  ;;  %vm385_vm2 = vcmask 261120  }
  0x26   :  { %s2439_s21 = sld [smem:[#allocation4 + $0x7]]  ;;  %s2441_s22 = sld [smem:[#allocation4 + $0x8]]  ;;  %v2479_v12 = vpack.c.bf16 %v393_v6, %v390_v5  ;;  %v2481_v13 = vsub.f32 %v374_v2, %v390_v5  ;;  %v2483_v14 = vsub.f32 %v375_v3, %v393_v6  ;;  %v2485_v15 = vsub.f32 %v376_v4, %v396_v8  ;;  %v877_v6 = vld [vmem:[#allocation5 + $0x10] sm:$0xff] }
  0x27   :  { %s2443_s23 = sld [smem:[#allocation4 + $0x9]]  ;;  %s2445_s24 = sld [smem:[#allocation4 + $0xa]]  ;;  %v2495_v17 = vsub.f32 %v377_v7, %v399_v10  ;;  %v2506_v20 = vpack.c.bf16 %v399_v10, %v396_v8  ;;  %v899_v62 = vand.u32 4294901760, %v875_v58  ;;  %v902_v5 = vand.u32 4294901760, %v876_v61 }
  0x28   :  { %s2447_s25 = sld [smem:[#allocation4 + $0xb]]  ;;  %s44_s9 = scalar_lea.vmem %s3144_s1, %s43_s15  ;;  %2094 = vmatpush3.bf16.msra.mxu0 %v2479_v12  ;;  %v471_v24 = vand.u32 4294901760, %v2481_v13  ;;  %v478_v25 = vand.u32 4294901760, %v2483_v14  ;;  %v2105_v26 = vpack.c.bf16 %v2483_v14, %v2481_v13  ;;  %v485_v34 = vand.u32 4294901760, %v2485_v15 }
  0x29   :  { %s48_s12 = scalar_lea.vmem %s3144_s1, %s1619_s16  ;;  %v45_v9 = vld [vmem:[%s44_s9] sm:$0x1]  ;;  %s53_s28 = scalar_lea.vmem %s3144_s1, %s2426_s17  ;;  %2095 = vmatprep.subr.bf16.mxu0 %v2369_v0  ;;  %v2108_v31 = vpack.c.bf16 %v2495_v17, %v2485_v15  ;;  %v492_v35 = vand.u32 4294901760, %v2495_v17  ;;  %v905_v10 = vand.u32 4294901760, %v877_v6 }
  0x2a   :  { %s58_s16 = scalar_lea.vmem %s3144_s1, %s2428_s18  ;;  %v49_v11 = vld [vmem:[%s48_s12] sm:$0x1]  ;;  %s63_s7 = scalar_lea.vmem %s3144_s1, %s2433_s4  ;;  %v472_v32 = vsub.f32 %v2481_v13, %v471_v24  ;;  %v479_v33 = vsub.f32 %v2483_v14, %v478_v25  ;;  %v2546_v39 = vpack.c.bf16 %v478_v25, %v471_v24  ;;  %v486_v42 = vsub.f32 %v2485_v15, %v485_v34  ;;  %v888_v13 = vld [vmem:[#allocation5 + $0x68] sm:$0xff] }
  0x2b   :  { %v54_v16 = vld [vmem:[%s53_s28] sm:$0x1]  ;;  %s68_s18 = scalar_lea.vmem %s3144_s1, %s2435_s19  ;;  %s73_s10 = scalar_lea.vmem %s3144_s1, %s2437_s20  ;;  %v50_v18 = vmax.f32 %v45_v9, %v49_v11  ;;  %v493_v43 = vsub.f32 %v2495_v17, %v492_v35  ;;  %v2565_v47 = vpack.c.bf16 %v492_v35, %v485_v34  ;;  %v2626_v9 = vsub.f32 %v875_v58, %v899_v62  ;;  %v880_v34 = vld [vmem:[#allocation5 + $0x28] sm:$0xff] }
  0x2c   :  { %v59_v19 = vld [vmem:[%s58_s16] sm:$0x1]  ;;  %s87_s12 = scalar_lea.vmem %s3144_s1, %s2441_s22  ;;  %s78_s30 = scalar_lea.vmem %s3144_s1, %s2439_s21  ;;  %2097 = vmatpush3.bf16.msra.mxu0 %v2506_v20  ;;  %v473_v40 = vand.u32 4294901760, %v472_v32  ;;  %v480_v41 = vand.u32 4294901760, %v479_v33  ;;  %v487_v49 = vand.u32 4294901760, %v486_v42  ;;  %v879_v32 = vld [vmem:[#allocation5 + $0x20] sm:$0xff] }
  0x2d   :  { %s91_s26 = scalar_lea.vmem %s3144_s1, %s2443_s23  ;;  %v64_v21 = vld [vmem:[%s63_s7] sm:$0x1]  ;;  %s96_s15 = scalar_lea.vmem %s3144_s1, %s2445_s24  ;;  %v55_v27 = vmax.f32 %v50_v18, %v54_v16  ;;  %2098 = vmatprep.subr.bf16.mxu0 %v2369_v0  ;;  %v494_v50 = vand.u32 4294901760, %v493_v43  ;;  %v2635_v18 = vsub.f32 %v876_v61, %v902_v5  ;;  %v911_v35 = vand.u32 4294901760, %v879_v32 }
  0x2e   :  { %v88_v22 = vld [vmem:[%s87_s12] sm:$0x1]  ;;  %s101_s29 = scalar_lea.vmem %s3144_s1, %s2447_s25  ;;  %s2525_s24 = sld [smem:[#allocation4 + $0xc]]  ;;  %v2571_v48 = vpack.c.bf16 %v480_v41, %v473_v40  ;;  %v881_v41 = vld [vmem:[#allocation5 + $0x30] sm:$0xff]  ;;  %v938_v15 = vand.u32 4294901760, %v888_v13 }
  0x2f   :  { %v92_v23 = vld [vmem:[%s91_s26] sm:$0x1]  ;;  %s2529_s25 = sld [smem:[#allocation4 + $0xd]]  ;;  %s2531_s7 = sld [smem:[#allocation4 + $0xe]]  ;;  %v60_v36 = vmax.f32 %v55_v27, %v59_v19  ;;  %v2592_v54 = vpack.c.bf16 %v494_v50, %v487_v49  ;;  %v2177_v27 = vpack.c.bf16 %v2635_v18, %v2626_v9  ;;  %v2675_v42 = vsub.f32 %v879_v32, %v911_v35 }
  0x30   :  { %v93_v28 = vmax.f32 %v88_v22, %v92_v23  ;;  %v97_v29 = vld [vmem:[%s96_s15] sm:$0x1]  ;;  %s2542_s8 = sld [smem:[#allocation4 + $0xf]]  ;;  %s2544_s9 = sld [smem:[#allocation4 + $0x10]] }
  0x31   :  { %v102_v30 = vld [vmem:[%s101_s29] sm:$0x1]  ;;  %s2549_s4 = sld [smem:[#allocation4 + $0x11]]  ;;  %s2551_s11 = sld [smem:[#allocation4 + $0x12]]  ;;  %v65_v44 = vmax.f32 %v60_v36, %v64_v21  ;;  %v2637_v21 = vpack.c.bf16 %v902_v5, %v899_v62  ;;  %2178 = vmatpush3.bf16.msra.mxu1 %v2177_v27 }
  0x32   :  { %v69_v37 = vld [vmem:[%s68_s18] sm:$0x1]  ;;  %v98_v38 = vmax.f32 %v93_v28, %v97_v29  ;;  %s2561_s12 = sld [smem:[#allocation4 + $0x13]]  ;;  %s2563_s13 = sld [smem:[#allocation4 + $0x14]]  ;;  %2179 = vmatprep.subr.bf16.mxu1 %v2369_v0 }
  0x33   :  { %v74_v45 = vld [vmem:[%s73_s10] sm:$0x1]  ;;  %s2567_s14 = sld [smem:[#allocation4 + $0x15]]  ;;  %s2569_s26 = sld [smem:[#allocation4 + $0x16]]  ;;  %v70_v51 = vmax.f32 %v65_v44, %v69_v37  ;;  %v917_v44 = vand.u32 4294901760, %v881_v41 }
  0x34   :  { %v103_v46 = vmax.f32 %v98_v38, %v102_v30  ;;  %s106_s27 = scalar_lea.vmem %s3144_s1, %s2525_s24  ;;  %s2577_s28 = sld [smem:[#allocation4 + $0x17]]  ;;  %v79_v52 = vld [vmem:[%s78_s30] sm:$0x1]  ;;  %v2653_v30 = vsub.f32 %v877_v6, %v905_v10  ;;  %v914_v38 = vand.u32 4294901760, %v880_v34 }
  0x35   :  { %v107_v53 = vld [vmem:[%s106_s27] sm:$0x1]  ;;  %s111_s22 = scalar_lea.vmem %s3144_s1, %s2529_s25  ;;  %s116_s17 = scalar_lea.vmem %s3144_s1, %s2531_s7  ;;  %v75_v55 = vmax.f32 %v70_v51, %v74_v45  ;;  %v883_v45 = vld [vmem:[#allocation5 + $0x40] sm:$0xff]  ;;  %v2702_v58 = vsub.f32 %v881_v41, %v917_v44 }
  0x36   :  { %v108_v56 = vmax.f32 %v103_v46, %v107_v53  ;;  %v112_v57 = vld [vmem:[%s111_s22] sm:$0x1]  ;;  %s121_s30 = scalar_lea.vmem %s3144_s1, %s2542_s8  ;;  %s128_s25 = scalar_lea.vmem %s3144_s1, %s2544_s9  ;;  %v884_v46 = vld [vmem:[#allocation5 + $0x48] sm:$0xff]  ;;  %v2692_v53 = vsub.f32 %v880_v34, %v914_v38 }
  0x37   :  { %v117_v59 = vld [vmem:[%s116_s17] sm:$0x1]  ;;  %s132_s10 = scalar_lea.vmem %s3144_s1, %s2549_s4  ;;  %s137_s0 = scalar_lea.vmem %s3144_s1, %s2551_s11  ;;  %v80_v63 = vmax.f32 %v75_v55, %v79_v52  ;;  %v926_v61 = vand.u32 4294901760, %v884_v46 }
  0x38   :  { %v129_v60 = vld [vmem:[%s128_s25] sm:$0x1]  ;;  %v113_v2 = vmax.f32 %v108_v56, %v112_v57  ;;  %s142_s16 = scalar_lea.vmem %s3144_s1, %s2561_s12  ;;  %s147_s23 = scalar_lea.vmem %s3144_s1, %s2563_s13 }
  0x39   :  { %v133_v3 = vld [vmem:[%s132_s10] sm:$0x1]  ;;  %s152_s2 = scalar_lea.vmem %s3144_s1, %s2567_s14  ;;  %s157_s24 = scalar_lea.vmem %s3144_s1, %s2569_s26  ;;  %82 = vst.msk [vmem:[#allocation2] sm:$0x1] %vm81_vm1, %v80_v63  ;;  %v2750_v27 = vsub.f32 %v884_v46, %v926_v61 }
  0x3a   :  { %v138_v4 = vld [vmem:[%s137_s0] sm:$0x1]  ;;  %v134_v8 = vmax.f32 %v129_v60, %v133_v3  ;;  %v118_v11 = vmax.f32 %v113_v2, %v117_v59  ;;  %s2633_s19 = sld [smem:[#allocation4 + $0x18]]  ;;  %s2639_s14 = sld [smem:[#allocation4 + $0x19]]  ;;  %v2704_v59 = vpack.c.bf16 %v914_v38, %v911_v35  ;;  %v923_v60 = vand.u32 4294901760, %v883_v45 }
  0x3b   :  { %v122_v7 = vld [vmem:[%s121_s30] sm:$0x1]  ;;  %s162_s30 = scalar_lea.vmem %s3144_s1, %s2577_s28  ;;  %s2641_s26 = sld [smem:[#allocation4 + $0x1a]]  ;;  %v2183_v2 = vpack.c.bf16 %v2692_v53, %v2675_v42 }
  0x3c   :  { %v143_v16 = vld [vmem:[%s142_s16] sm:$0x1]  ;;  %v139_v22 = vmax.f32 %v134_v8, %v138_v4  ;;  %v123_v24 = vmax.f32 %v118_v11, %v122_v7  ;;  %s2643_s18 = sld [smem:[#allocation4 + $0x1b]]  ;;  %s2645_s25 = sld [smem:[#allocation4 + $0x1c]]  ;;  %v2718_v4 = vld [vmem:[#allocation5 + $0x50] sm:$0xff] }
  0x3d   :  { %v878_v19 = vld [vmem:[#allocation5 + $0x18] sm:$0xff]  ;;  %s2649_s7 = sld [smem:[#allocation4 + $0x1d]]  ;;  %s2651_s20 = sld [smem:[#allocation4 + $0x1e]] }
  0x3e   :  { %v148_v23 = vld [vmem:[%s147_s23] sm:$0x1]  ;;  %v144_v28 = vmax.f32 %v139_v22, %v143_v16  ;;  %v908_v29 = vand.u32 4294901760, %v878_v19  ;;  %124 = vst.msk [vmem:[#allocation2 + $0x1] sm:$0x1] %vm81_vm1, %v123_v24  ;;  %s2656_s10 = sld [smem:[#allocation4 + $0x1f]] }
  0x3f   :  { %v153_v25 = vld [vmem:[%s152_s2] sm:$0x1]  ;;  %s2658_s27 = sld [smem:[#allocation4 + $0x20]]  ;;  %s2660_s15 = sld [smem:[#allocation4 + $0x21]] }
  0x40   :  { %v158_v33 = vld [vmem:[%s157_s24] sm:$0x1]  ;;  %v149_v36 = vmax.f32 %v144_v28, %v148_v23  ;;  %s2662_s0 = sld [smem:[#allocation4 + $0x22]]  ;;  %v2665_v37 = vsub.f32 %v878_v19, %v908_v29  ;;  %v2667_v40 = vpack.c.bf16 %v908_v29, %v905_v10  ;;  %s169_s16 = scalar_lea.vmem %s3144_s1, %s2633_s19  ;;  %v929_v19 = vand.u32 4294901760, %v2718_v4 }
  0x41   :  { %s2673_s29 = sld [smem:[#allocation4 + $0x23]]  ;;  %v882_v43 = vld [vmem:[#allocation5 + $0x38] sm:$0xff]  ;;  %s173_s2 = scalar_lea.vmem %s3144_s1, %s2639_s14  ;;  %v2752_v28 = vpack.c.bf16 %v926_v61, %v923_v60 }
  0x42   :  { %v154_v49 = vmax.f32 %v149_v36, %v153_v25  ;;  %v163_v50 = vld [vmem:[%s162_s30] sm:$0x1]  ;;  %s178_s24 = scalar_lea.vmem %s3144_s1, %s2641_s26  ;;  %v2180_v52 = vpack.c.bf16 %v2665_v37, %v2653_v30  ;;  %v920_v55 = vand.u32 4294901760, %v882_v43  ;;  %s183_s13 = scalar_lea.vmem %s3144_s1, %s2643_s18  ;;  %v2748_v25 = vsub.f32 %v883_v45, %v923_v60 }
  0x43   :  { %v170_v51 = vld [vmem:[%s169_s16] sm:$0x1]  ;;  %s188_s14 = scalar_lea.vmem %s3144_s1, %s2645_s25  ;;  %s193_s9 = scalar_lea.vmem %s3144_s1, %s2649_s7  ;;  %v2789_v46 = vsub.f32 %v2718_v4, %v929_v19 }
  0x44   :  { %v174_v56 = vld [vmem:[%s173_s2] sm:$0x1]  ;;  %v159_v62 = vmax.f32 %v154_v49, %v158_v33  ;;  %s198_s18 = scalar_lea.vmem %s3144_s1, %s2651_s20  ;;  %2181 = vmatpush3.bf16.msra.mxu1 %v2180_v52  ;;  %v2716_v3 = vsub.f32 %v882_v43, %v920_v55  ;;  %s203_s7 = scalar_lea.vmem %s3144_s1, %s2656_s10  ;;  %v2729_v6 = vpack.c.bf16 %v920_v55, %v917_v44  ;;  %v2189_v43 = vpack.c.bf16 %v2750_v27, %v2748_v25 }
  0x45   :  { %v179_v57 = vld [vmem:[%s178_s24] sm:$0x1]  ;;  %v175_v63 = vmax.f32 %v170_v51, %v174_v56  ;;  %s210_s2 = scalar_lea.vmem %s3144_s1, %s2658_s27  ;;  %2182 = vmatprep.subr.bf16.mxu1 %v2369_v0  ;;  %s214_s24 = scalar_lea.vmem %s3144_s1, %s2660_s15 }
  0x46   :  { %v184_v5 = vld [vmem:[%s183_s13] sm:$0x1]  ;;  %v164_v8 = vmax.f32 %v159_v62, %v163_v50  ;;  %s219_s13 = scalar_lea.vmem %s3144_s1, %s2662_s0  ;;  %s2746_s26 = sld [smem:[#allocation4 + $0x24]]  ;;  %v2186_v33 = vpack.c.bf16 %v2716_v3, %v2702_v58 }
  0x47   :  { %v2731_v7 = vld [vmem:[#allocation5 + $0x58] sm:$0xff]  ;;  %v180_v10 = vmax.f32 %v175_v63, %v179_v57  ;;  %s224_s19 = scalar_lea.vmem %s3144_s1, %s2673_s29  ;;  %s2755_s15 = sld [smem:[#allocation4 + $0x25]] }
  0x48   :  { %v189_v11 = vld [vmem:[%s188_s14] sm:$0x1]  ;;  %165 = vst.msk [vmem:[#allocation2 + $0x2] sm:$0x1] %vm81_vm1, %v164_v8  ;;  %s2757_s0 = sld [smem:[#allocation4 + $0x26]]  ;;  %2184 = vmatpush3.bf16.msra.mxu1 %v2183_v2  ;;  %v932_v34 = vand.u32 4294901760, %v2731_v7 }
  0x49   :  { %v211_v16 = vld [vmem:[%s210_s2] sm:$0x1]  ;;  %v185_v29 = vmax.f32 %v180_v10, %v184_v5  ;;  %s2762_s29 = sld [smem:[#allocation4 + $0x27]]  ;;  %s2764_s14 = sld [smem:[#allocation4 + $0x28]]  ;;  %2185 = vmatprep.subr.bf16.mxu1 %v2369_v0 }
  0x4a   :  { %v194_v22 = vld [vmem:[%s193_s9] sm:$0x1]  ;;  %s2767_s8 = sld [smem:[#allocation4 + $0x29]]  ;;  %s2769_s9 = sld [smem:[#allocation4 + $0x2a]]  ;;  %v2794_v49 = vsub.f32 %v2731_v7, %v932_v34 }
  0x4b   :  { %v215_v23 = vld [vmem:[%s214_s24] sm:$0x1]  ;;  %v190_v36 = vmax.f32 %v185_v29, %v189_v11  ;;  %s2776_s25 = sld [smem:[#allocation4 + $0x2b]]  ;;  %s2778_s23 = sld [smem:[#allocation4 + $0x2c]] }
  0x4c   :  { %v220_v24 = vld [vmem:[%s219_s13] sm:$0x1]  ;;  %v216_v32 = vmax.f32 %v211_v16, %v215_v23  ;;  %s2782_s4 = sld [smem:[#allocation4 + $0x2d]]  ;;  %s2784_s11 = sld [smem:[#allocation4 + $0x2e]]  ;;  %2187 = vmatpush3.bf16.msra.mxu1 %v2186_v33  ;;  %v2192_v62 = vpack.c.bf16 %v2794_v49, %v2789_v46 }
  0x4d   :  { %v225_v35 = vld [vmem:[%s224_s19] sm:$0x1]  ;;  %v195_v44 = vmax.f32 %v190_v36, %v194_v22  ;;  %s229_s21 = scalar_lea.vmem %s3144_s1, %s2746_s26  ;;  %s2805_s24 = sld [smem:[#allocation4 + $0x2f]]  ;;  %2188 = vmatprep.subr.bf16.mxu1 %v2369_v0 }
  0x4e   :  { %v221_v38 = vmax.f32 %v216_v32, %v220_v24  ;;  %v199_v41 = vld [vmem:[%s198_s18] sm:$0x1]  ;;  %s234_s13 = scalar_lea.vmem %s3144_s1, %s2755_s15  ;;  %s239_s10 = scalar_lea.vmem %s3144_s1, %s2757_s0 }
  0x4f   :  { %v204_v50 = vld [vmem:[%s203_s7] sm:$0x1]  ;;  %v200_v51 = vmax.f32 %v195_v44, %v199_v41  ;;  %s244_s26 = scalar_lea.vmem %s3144_s1, %s2762_s29  ;;  %s251_s20 = scalar_lea.vmem %s3144_s1, %s2764_s14 }
  0x50   :  { %v226_v45 = vmax.f32 %v221_v38, %v225_v35  ;;  %v230_v52 = vld [vmem:[%s229_s21] sm:$0x1]  ;;  %s255_s0 = scalar_lea.vmem %s3144_s1, %s2767_s8  ;;  %s260_s21 = scalar_lea.vmem %s3144_s1, %s2769_s9  ;;  %2190 = vmatpush3.bf16.msra.mxu1 %v2189_v43 }
  0x51   :  { %v235_v56 = vld [vmem:[%s234_s13] sm:$0x1]  ;;  %v205_v57 = vmax.f32 %v200_v51, %v204_v50  ;;  %s265_s28 = scalar_lea.vmem %s3144_s1, %s2776_s25  ;;  %s270_s8 = scalar_lea.vmem %s3144_s1, %s2778_s23  ;;  %2191 = vmatprep.subr.bf16.mxu1 %v2369_v0 }
  0x52   :  { %v231_v55 = vmax.f32 %v226_v45, %v230_v52  ;;  %v240_v60 = vld [vmem:[%s239_s10] sm:$0x1]  ;;  %s275_s30 = scalar_lea.vmem %s3144_s1, %s2782_s4  ;;  %s280_s19 = scalar_lea.vmem %s3144_s1, %s2784_s11 }
  0x53   :  { %v252_v61 = vld [vmem:[%s251_s20] sm:$0x1]  ;;  %206 = vst.msk [vmem:[#allocation2 + $0x3] sm:$0x1] %vm81_vm1, %v205_v57  ;;  %s285_s23 = scalar_lea.vmem %s3144_s1, %s2805_s24  ;;  %s1666_s22 = sld [smem:[#allocation4 + $0x30]] }
  0x54   :  { %v236_v63 = vmax.f32 %v231_v55, %v235_v56  ;;  %v256_v2 = vld [vmem:[%s255_s0] sm:$0x1]  ;;  %s1667_s20 = sld [smem:[#allocation4 + $0x31]]  ;;  %s1668_s15 = sld [smem:[#allocation4 + $0x32]]  ;;  %2193 = vmatpush3.bf16.msra.mxu1 %v2192_v62 }
  0x55   :  { %v261_v5 = vld [vmem:[%s260_s21] sm:$0x1]  ;;  %v257_v10 = vmax.f32 %v252_v61, %v256_v2  ;;  %s2856_s18 = sld [smem:[#allocation4 + $0x34]]  ;;  %2194 = vmatprep.subr.bf16.mxu1 %v2369_v0  ;;  %s2859_s4 = sld [smem:[#allocation4 + $0x35]] }
  0x56   :  { %v245_v8 = vld [vmem:[%s244_s26] sm:$0x1]  ;;  %v241_v11 = vmax.f32 %v236_v63, %v240_v60  ;;  %s1669_s26 = sld [smem:[#allocation4 + $0x33]]  ;;  %s2861_s11 = sld [smem:[#allocation4 + $0x36]] }
  0x57   :  { %v266_v16 = vld [vmem:[%s265_s28] sm:$0x1]  ;;  %v262_v22 = vmax.f32 %v257_v10, %v261_v5  ;;  %s2864_s24 = sld [smem:[#allocation4 + $0x37]]  ;;  %s1674_s0 = sld [smem:[#allocation4 + $0x38]] }
  0x58   :  { %v246_v23 = vmax.f32 %v241_v11, %v245_v8  ;;  %v271_v24 = vld [vmem:[%s270_s8] sm:$0x1]  ;;  %s1675_s2 = sld [smem:[#allocation4 + $0x39]]  ;;  %s1676_s17 = sld [smem:[#allocation4 + $0x3a]] }
  0x59   :  { %v267_v29 = vmax.f32 %v262_v22, %v266_v16  ;;  %v276_v32 = vld [vmem:[%s275_s30] sm:$0x1]  ;;  %s292_s14 = scalar_lea.vmem %s3144_s1, %s1666_s22  ;;  %s2869_s28 = sld [smem:[#allocation4 + $0x3b]] }
  0x5a   :  { %247 = vst.msk [vmem:[#allocation2 + $0x4] sm:$0x1] %vm81_vm1, %v246_v23  ;;  %v281_v35 = vld [vmem:[%s280_s19] sm:$0x1]  ;;  %s296_s8 = scalar_lea.vmem %s3144_s1, %s1667_s20  ;;  %s301_s30 = scalar_lea.vmem %s3144_s1, %s1668_s15 }
  0x5b   :  { %v272_v33 = vmax.f32 %v267_v29, %v271_v24  ;;  %v293_v38 = vld [vmem:[%s292_s14] sm:$0x1]  ;;  %s311_s22 = scalar_lea.vmem %s3144_s1, %s2856_s18  ;;  %s316_s29 = scalar_lea.vmem %s3144_s1, %s2859_s4 }
  0x5c   :  { %v286_v41 = vld [vmem:[%s285_s23] sm:$0x1]  ;;  %s306_s19 = scalar_lea.vmem %s3144_s1, %s1669_s26  ;;  %s321_s14 = scalar_lea.vmem %s3144_s1, %s2861_s11 }
  0x5d   :  { %v277_v36 = vmax.f32 %v272_v33, %v276_v32  ;;  %v297_v43 = vld [vmem:[%s296_s8] sm:$0x1]  ;;  %s333_s26 = scalar_lea.vmem %s3144_s1, %s1674_s0  ;;  %s1678_s0 = sld [smem:[#allocation4 + $0x3c]] }
  0x5e   :  { %v302_v44 = vld [vmem:[%s301_s30] sm:$0x1]  ;;  %v298_v50 = vmax.f32 %v293_v38, %v297_v43  ;;  %s337_s9 = scalar_lea.vmem %s3144_s1, %s1675_s2  ;;  %s342_s30 = scalar_lea.vmem %s3144_s1, %s1676_s17 }
  0x5f   :  { %v282_v45 = vmax.f32 %v277_v36, %v281_v35  ;;  %v307_v51 = vld [vmem:[%s306_s19] sm:$0x1]  ;;  %s347_s7 = scalar_lea.vmem %s3144_s1, %s2869_s28  ;;  %s1679_s19 = sld [smem:[#allocation4 + $0x3d]] }
  0x60   :  { %v303_v55 = vmax.f32 %v298_v50, %v302_v44  ;;  %v312_v56 = vld [vmem:[%s311_s22] sm:$0x1]  ;;  %s1680_s25 = sld [smem:[#allocation4 + $0x3e]]  ;;  %s1681_s2 = sld [smem:[#allocation4 + $0x3f]] }
  0x61   :  { %v287_v52 = vmax.f32 %v282_v45, %v286_v41  ;;  %v334_v57 = vld [vmem:[%s333_s26] sm:$0x1]  ;;  %s326_s17 = scalar_lea.vmem %s3144_s1, %s2864_s24  ;;  %s2372_s27 = smov [#allocation8]  }
  0x62   :  { %v338_v60 = vld [vmem:[%s337_s9] sm:$0x1]  ;;  %v308_v62 = vmax.f32 %v303_v55, %v307_v51  ;;  %s1546_s4 = sshll.u32 %s2372_s27, 4  ;;  %s1547_s4 = int_to_ptr.vmem [resolvable:$true] %s1546_s4 }
  0x63   :  { %v343_v61 = vld [vmem:[%s342_s30] sm:$0x1]  ;;  %288 = vst.msk [vmem:[#allocation2 + $0x5] sm:$0x1] %vm81_vm1, %v287_v52  ;;  %v339_v63 = vmax.f32 %v334_v57, %v338_v60  ;;  %s352_s20 = scalar_lea.vmem %s3144_s1, %s1678_s0  ;;  %s2337_s30 = scalar_lea.vmem %s1547_s4, 128 }
  0x64   :  { %v317_v2 = vld [vmem:[%s316_s29] sm:$0x1]  ;;  %v313_v8 = vmax.f32 %v308_v62, %v312_v56  ;;  %p2338_p13 = scmp.ne.s32.totalorder %s1547_s4, %s2337_s30  ;;  %p2342_p0 = scmp.lt.s32.totalorder %s1547_s4, %s1547_s4 }
  0x65   :  { %v348_v5 = vld [vmem:[%s347_s7] sm:$0x1]  ;;  %v344_v10 = vmax.f32 %v339_v63, %v343_v61  ;;  %s357_s23 = scalar_lea.vmem %s3144_s1, %s1679_s19  ;;  %p2343_p1 = scmp.lt.s32.totalorder %s2337_s30, %s2337_s30 }
  0x66   :  { %v322_v11 = vld [vmem:[%s321_s14] sm:$0x1]  ;;  %v318_v16 = vmax.f32 %v313_v8, %v317_v2  ;;  %s362_s26 = scalar_lea.vmem %s3144_s1, %s1680_s25  ;;  %s367_s18 = scalar_lea.vmem %s3144_s1, %s1681_s2 }
  0x67   :  { %v349_v22 = vmax.f32 %v344_v10, %v348_v5  ;;  %v327_v23 = vld [vmem:[%s326_s17] sm:$0x1]  ;;  %p2344_p2 = por %p2343_p1, %p2342_p0 }
  0x68   :  { %v323_v24 = vmax.f32 %v318_v16, %v322_v11  ;;  %v353_v29 = vld [vmem:[%s352_s20] sm:$0x1] }
  0x69   :  { %v354_v32 = vmax.f32 %v349_v22, %v353_v29  ;;  %v358_v33 = vld [vmem:[%s357_s23] sm:$0x1]  ;;  %p2345_p3 = pnand %p2344_p2, %p2338_p13 }
  0x6a   :  { %v328_v35 = vmax.f32 %v323_v24, %v327_v23  ;;  %v363_v36 = vld [vmem:[%s362_s26] sm:$0x1] }
  0x6b   :  { %v359_v38 = vmax.f32 %v354_v32, %v358_v33  ;;  %v368_v41 = vld [vmem:[%s367_s18] sm:$0x1] }
  0x6c   :  { %329 = vst.msk [vmem:[#allocation2 + $0x6] sm:$0x1] %vm81_vm1, %v328_v35 }
  0x6d   :  { %v364_v43 = vmax.f32 %v359_v38, %v363_v36 }
  0x6f   :  { %v369_v44 = vmax.f32 %v364_v43, %v368_v41  ;;  %v1682_v41 = vld [vmem:[%s3146_s3] ss:$0 sm:$0xff]  ;;  %v992_v43 = vand.u32 4294901760, %v2626_v9 }
  0x71   :  { %370 = vst.msk [vmem:[#allocation2 + $0x7] sm:$0x1] %vm81_vm1, %v369_v44  ;;  %v999_v44 = vand.u32 4294901760, %v2635_v18 }
  0x78   :  { %v371_v45 = vld [vmem:[#allocation2] sm:$0xff] }
  0x79   :  { %2301 = vtanh.f32 %v371_v45 }
  0x83   :  { %v2302_v50 = vpop.eup %2301 }
  0x84   :  { %v373_v51 = vmax.f32 %v2302_v50, 0.0 }
  0x86   :  { %v387_v52 = vsel %vm385_vm2, %v373_v51, 0 }
  0x87   :  { %v458_v55 = vand.u32 4294901760, %v387_v52 }
  0x89   :  { %v459_v56 = vsub.f32 %v387_v52, %v458_v55 }
  0x8b   :  { %v460_v57 = vand.u32 4294901760, %v459_v56 }
  0x8d   :  { %v461_v60 = vsub.f32 %v459_v56, %v460_v57 }
  0x8f   :  { %v462_v61 = vand.u32 4294901760, %v461_v60  ;;  %v1013_v60 = vand.u32 4294901760, %v2665_v37 }
  0x91   :  { %1825 = vmatmul.mubr.f32.vlgmr.msra.gmra.mrb[0].mxu0 %v462_v61 }
  0x92   :  { %2100 = vmatpush3.bf16.msra.mxu0 %v2571_v48  ;;  %1835 = vmatprep.mubr.msk.f32.mxu0 %vm2370_vm0, %v2371_v1 }
  0x93   :  { %2101 = vmatprep.subr.bf16.mxu0 %v2369_v0 }
  0x96   :  { %2103 = vmatpush3.bf16.msra.mxu0 %v2592_v54  ;;  %v2974_v54 = vpack.c.bf16 %v932_v34, %v929_v19 }
  0x97   :  { %2104 = vmatprep.subr.bf16.mxu0 %v2369_v0 }
  0x99   :  { %1836 = vmatmul.mubr.f32.vlgmr.msra.gmra.mrb[0].mxu0 %v458_v55 }
  0x9a   :  { %2106 = vmatpush3.bf16.msra.mxu0 %v2105_v26  ;;  %1846 = vmatprep.mubr.msk.f32.mxu0 %vm2370_vm0, %v2371_v1  ;;  %v889_v26 = vld [vmem:[#allocation5 + $0x70] sm:$0xff] }
  0x9b   :  { %2107 = vmatprep.subr.bf16.mxu0 %v2369_v0 }
  0x9e   :  { %2109 = vmatpush3.bf16.msra.mxu0 %v2108_v31  ;;  %v890_v31 = vld [vmem:[#allocation5 + $0x78] sm:$0xff] }
  0x9f   :  { %2110 = vmatprep.subr.bf16.mxu0 %v2369_v0  ;;  %v944_v48 = vand.u32 4294901760, %v890_v31 }
  0xa1   :  { %1847 = vmatmul.mubr.f32.vlgmr.msra.gmra.mrb[0].mxu0 %v459_v56  ;;  %v1096_v63 = vsub.f32 %v890_v31, %v944_v48  ;;  %v1000_v56 = vsub.f32 %v2635_v18, %v999_v44 }
  0xa2   :  { %2112 = vmatpush3.bf16.msra.mxu0 %v2479_v12  ;;  %1857 = vmatprep.mubr.msk.f32.mxu0 %vm2370_vm0, %v2371_v1 }
  0xa3   :  { %2113 = vmatprep.subr.bf16.mxu0 %v2369_v0  ;;  %v1097_v22 = vand.u32 4294901760, %v1096_v63 }
  0xa5   :  { %v1098_v29 = vsub.f32 %v1096_v63, %v1097_v22 }
  0xa6   :  { %2115 = vmatpush3.bf16.msra.mxu0 %v2506_v20 }
  0xa7   :  { %2116 = vmatprep.subr.bf16.mxu0 %v2369_v0  ;;  %v1099_v33 = vand.u32 4294901760, %v1098_v29  ;;  %v1055_v29 = vand.u32 4294901760, %v2750_v27 }
  0xa9   :  { %1858 = vmatmul.mubr.f32.vlgmr.msra.gmra.mrb[0].mxu0 %v460_v57  ;;  %v1006_v57 = vand.u32 4294901760, %v2653_v30 }
  0xaa   :  { %2118 = vmatpush3.bf16.msra.mxu0 %v2546_v39  ;;  %1868 = vmatprep.mubr.msk.f32.mxu0 %vm2370_vm0, %v2371_v1 }
  0xab   :  { %2119 = vmatprep.subr.bf16.mxu0 %v2369_v0 }
  0xae   :  { %2121 = vmatpush3.bf16.msra.mxu0 %v2565_v47  ;;  %v941_v47 = vand.u32 4294901760, %v889_v26 }
  0xaf   :  { %2122 = vmatprep.subr.bf16.mxu0 %v2369_v0 }
  0xb0   :  { %v1089_v62 = vsub.f32 %v889_v26, %v941_v47  ;;  %v2984_v4 = vpack.c.bf16 %v944_v48, %v941_v47  ;;  %v1014_v26 = vsub.f32 %v2665_v37, %v1013_v60 }
  0xb1   :  { %1869 = vmatmul.mubr.f32.vlgmr.msra.gmra.mrb[0].mxu0 %v458_v55 }
  0xb2   :  { %2124 = vmatpush3.bf16.msra.mxu0 %v2479_v12  ;;  %1879 = vmatprep.mubr.msk.f32.mxu0 %vm2370_vm0, %v2371_v1  ;;  %v887_v12 = vld [vmem:[#allocation5 + $0x60] sm:$0xff]  ;;  %v2198_v2 = vpack.c.bf16 %v1096_v63, %v1089_v62  ;;  %v1090_v16 = vand.u32 4294901760, %v1089_v62  ;;  %v1041_v63 = vand.u32 4294901760, %v2716_v3 }
  0xb3   :  { %2125 = vmatprep.subr.bf16.mxu0 %v2369_v0  ;;  %v935_v14 = vand.u32 4294901760, %v887_v12 }
  0xb4   :  { %v1091_v24 = vsub.f32 %v1089_v62, %v1090_v16  ;;  %v2994_v38 = vpack.c.bf16 %v1097_v22, %v1090_v16  ;;  %v1034_v62 = vand.u32 4294901760, %v2702_v58  ;;  %v1042_v16 = vsub.f32 %v2716_v3, %v1041_v63 }
  0xb5   :  { %v1075_v17 = vsub.f32 %v887_v12, %v935_v14  ;;  %v2979_v5 = vpack.c.bf16 %v938_v15, %v935_v14  ;;  %v1020_v12 = vand.u32 4294901760, %v2675_v42  ;;  %v1027_v14 = vand.u32 4294901760, %v2692_v53 }
  0xb6   :  { %2127 = vmatpush3.bf16.msra.mxu0 %v2506_v20  ;;  %v1082_v20 = vsub.f32 %v888_v13, %v938_v15  ;;  %v1092_v32 = vand.u32 4294901760, %v1091_v24  ;;  %v1048_v24 = vand.u32 4294901760, %v2748_v25  ;;  %v2234_v18 = vpack.c.bf16 %v1041_v63, %v1034_v62 }
  0xb7   :  { %2128 = vmatprep.subr.bf16.mxu0 %v2369_v0  ;;  %v1076_v7 = vand.u32 4294901760, %v1075_v17  ;;  %v1028_v48 = vsub.f32 %v2692_v53, %v1027_v14 }
  0xb8   :  { %v2195_v39 = vpack.c.bf16 %v1082_v20, %v1075_v17  ;;  %v1083_v19 = vand.u32 4294901760, %v1082_v20  ;;  %v2990_v35 = vpack.c.bf16 %v1099_v33, %v1092_v32 }
  0xb9   :  { %1880 = vmatmul.mubr.f32.vlgmr.msra.gmra.mrb[0].mxu0 %v458_v55  ;;  %v1077_v34 = vsub.f32 %v1075_v17, %v1076_v7  ;;  %v993_v55 = vsub.f32 %v2626_v9, %v992_v43  ;;  %v1001_v17 = vand.u32 4294901760, %v1000_v56  ;;  %v2231_v9 = vpack.c.bf16 %v1027_v14, %v1020_v12 }
  0xba   :  { %2130 = vmatpush3.bf16.msra.mxu0 %v2637_v21  ;;  %1914 = vmatprep.mubr.msk.f32.mxu0 %vm2370_vm0, %v2371_v1  ;;  %v1084_v8 = vsub.f32 %v1082_v20, %v1083_v19  ;;  %v2992_v36 = vpack.c.bf16 %v1083_v19, %v1076_v7  ;;  %v1007_v20 = vsub.f32 %v2653_v30, %v1006_v57  ;;  %v1015_v19 = vand.u32 4294901760, %v1014_v26 }
  0xbb   :  { %2131 = vmatprep.subr.bf16.mxu0 %v2369_v0  ;;  %2196 = vmatpush3.bf16.msra.mxu1 %v2195_v39  ;;  %v1078_v10 = vand.u32 4294901760, %v1077_v34  ;;  %v994_v15 = vand.u32 4294901760, %v993_v55  ;;  %v1021_v39 = vsub.f32 %v2675_v42, %v1020_v12  ;;  %v2237_v30 = vpack.c.bf16 %v1055_v29, %v1048_v24 }
  0xbc   :  { %2197 = vmatprep.subr.bf16.mxu1 %v2369_v0  ;;  %v1085_v11 = vand.u32 4294901760, %v1084_v8  ;;  %v1008_v7 = vand.u32 4294901760, %v1007_v20 }
  0xbd   :  { %v1022_v8 = vand.u32 4294901760, %v1021_v39  ;;  %v2228_v39 = vpack.c.bf16 %v1013_v60, %v1006_v57 }
  0xbe   :  { %2133 = vmatpush3.bf16.msra.mxu0 %v2667_v40  ;;  %v2988_v23 = vpack.c.bf16 %v1085_v11, %v1078_v10  ;;  %v1029_v10 = vand.u32 4294901760, %v1028_v48  ;;  %v1035_v11 = vsub.f32 %v2702_v58, %v1034_v62  ;;  %v2156_v22 = vpack.c.bf16 %v1015_v19, %v1008_v7 }
  0xbf   :  { %2134 = vmatprep.subr.bf16.mxu0 %v2369_v0  ;;  %2199 = vmatpush3.bf16.msra.mxu1 %v2198_v2  ;;  %v2153_v2 = vpack.c.bf16 %v1001_v17, %v994_v15 }
  0xc0   :  { %2200 = vmatprep.subr.bf16.mxu1 %v2369_v0  ;;  %v2159_v32 = vpack.c.bf16 %v1029_v10, %v1022_v8  ;;  %v1036_v33 = vand.u32 4294901760, %v1035_v11 }
  0xc2   :  { %2136 = vmatpush3.bf16.msra.mxu0 %v2704_v59 }
  0xc3   :  { %2137 = vmatprep.subr.bf16.mxu0 %v2369_v0 }
  0xc6   :  { %2139 = vmatpush3.bf16.msra.mxu0 %v2729_v6 }
  0xc7   :  { %2140 = vmatprep.subr.bf16.mxu0 %v2369_v0 }
  0xca   :  { %2142 = vmatpush3.bf16.msra.mxu0 %v2752_v28 }
  0xcb   :  { %2143 = vmatprep.subr.bf16.mxu0 %v2369_v0 }
  0xce   :  { %2145 = vmatpush3.bf16.msra.mxu0 %v2974_v54 }
  0xcf   :  { %2146 = vmatprep.subr.bf16.mxu0 %v2369_v0 }
  0xd2   :  { %2148 = vmatpush3.bf16.msra.mxu0 %v2979_v5 }
  0xd3   :  { %2149 = vmatprep.subr.bf16.mxu0 %v2369_v0 }
  0xd6   :  { %2151 = vmatpush3.bf16.msra.mxu0 %v2984_v4 }
  0xd7   :  { %2152 = vmatprep.subr.bf16.mxu0 %v2369_v0 }
 0x18c   :  { %v870_v45 = vpop.f32.mrb[0].mxu0 }
 0x18d   :  { %v2272_v50 = vadd.f32 %v1682_v41, %v870_v45  ;;  %v1881_v51 = vpop.f32.mrb[1].mxu0  ;;  %v1043_v41 = vand.u32 4294901760, %v1042_v16  ;;  %v1049_v45 = vsub.f32 %v2748_v25, %v1048_v24 }
 0x18e   :  { %v1062_v51 = vand.u32 4294901760, %v2789_v46 }
 0x18f   :  { %v874_v52 = vmax.f32 %v2272_v50, 0.0  ;;  %v1056_v50 = vsub.f32 %v2750_v27, %v1055_v29  ;;  %v2162_v55 = vpack.c.bf16 %v1043_v41, %v1036_v33  ;;  %v1050_v56 = vand.u32 4294901760, %v1049_v45 }
 0x190   :  { %v1063_v17 = vsub.f32 %v2789_v46, %v1062_v51 }
 0x191   :  { %v3009_v61 = vand.u32 4294901760, %v874_v52  ;;  %v1057_v15 = vand.u32 4294901760, %v1056_v50 }
 0x192   :  { %v1064_v20 = vand.u32 4294901760, %v1063_v17 }
 0x193   :  { %v3013_v13 = vsub.f32 %v874_v52, %v3009_v61  ;;  %v1069_v52 = vand.u32 4294901760, %v2794_v49  ;;  %v2165_v27 = vpack.c.bf16 %v1057_v15, %v1050_v56 }
 0x195   :  { %v981_v31 = vand.u32 4294901760, %v3013_v13  ;;  %1985 = vmatmul.mubr.f32.vlgmr.msra.gmra.mrb[0].mxu1 %v3013_v13  ;;  %v1070_v25 = vsub.f32 %v2794_v49, %v1069_v52  ;;  %v2225_v49 = vpack.c.bf16 %v999_v44, %v992_v43  ;;  %v2240_v37 = vpack.c.bf16 %v1069_v52, %v1062_v51 }
 0x196   :  { %2202 = vmatpush3.bf16.msra.mxu1 %v2637_v21  ;;  %2019 = vmatprep.mubr.msk.f32.mxu1 %vm2370_vm0, %v2371_v1 }
 0x197   :  { %v982_v47 = vsub.f32 %v3013_v13, %v981_v31  ;;  %2203 = vmatprep.subr.bf16.mxu1 %v2369_v0  ;;  %v1071_v26 = vand.u32 4294901760, %v1070_v25 }
 0x199   :  { %v983_v34 = vand.u32 4294901760, %v982_v47  ;;  %v2168_v46 = vpack.c.bf16 %v1071_v26, %v1064_v20 }
 0x19a   :  { %2205 = vmatpush3.bf16.msra.mxu1 %v2667_v40 }
 0x19b   :  { %1915 = vmatmul.mubr.f32.vlgmr.msra.gmra.mrb[2].mxu0 %v983_v34  ;;  %2206 = vmatprep.subr.bf16.mxu1 %v2369_v0 }
 0x19c   :  { %2154 = vmatpush3.bf16.msra.mxu0 %v2153_v2  ;;  %1949 = vmatprep.mubr.msk.f32.mxu0 %vm2370_vm0, %v2371_v1 }
 0x19d   :  { %2155 = vmatprep.subr.bf16.mxu0 %v2369_v0 }
 0x19e   :  { %2208 = vmatpush3.bf16.msra.mxu1 %v2704_v59 }
 0x19f   :  { %2209 = vmatprep.subr.bf16.mxu1 %v2369_v0 }
 0x1a0   :  { %2157 = vmatpush3.bf16.msra.mxu0 %v2156_v22 }
 0x1a1   :  { %2158 = vmatprep.subr.bf16.mxu0 %v2369_v0 }
 0x1a2   :  { %2211 = vmatpush3.bf16.msra.mxu1 %v2729_v6 }
 0x1a3   :  { %2212 = vmatprep.subr.bf16.mxu1 %v2369_v0 }
 0x1a4   :  { %2160 = vmatpush3.bf16.msra.mxu0 %v2159_v32 }
 0x1a5   :  { %2161 = vmatprep.subr.bf16.mxu0 %v2369_v0 }
 0x1a6   :  { %2214 = vmatpush3.bf16.msra.mxu1 %v2752_v28 }
 0x1a7   :  { %2215 = vmatprep.subr.bf16.mxu1 %v2369_v0 }
 0x1a8   :  { %2163 = vmatpush3.bf16.msra.mxu0 %v2162_v55 }
 0x1a9   :  { %2164 = vmatprep.subr.bf16.mxu0 %v2369_v0 }
 0x1aa   :  { %2217 = vmatpush3.bf16.msra.mxu1 %v2974_v54 }
 0x1ab   :  { %2218 = vmatprep.subr.bf16.mxu1 %v2369_v0 }
 0x1ac   :  { %2166 = vmatpush3.bf16.msra.mxu0 %v2165_v27 }
 0x1ad   :  { %2167 = vmatprep.subr.bf16.mxu0 %v2369_v0 }
 0x1ae   :  { %2220 = vmatpush3.bf16.msra.mxu1 %v2979_v5 }
 0x1af   :  { %2221 = vmatprep.subr.bf16.mxu1 %v2369_v0 }
 0x1b0   :  { %2169 = vmatpush3.bf16.msra.mxu0 %v2168_v46 }
 0x1b1   :  { %2170 = vmatprep.subr.bf16.mxu0 %v2369_v0 }
 0x1b2   :  { %2223 = vmatpush3.bf16.msra.mxu1 %v2984_v4 }
 0x1b3   :  { %2224 = vmatprep.subr.bf16.mxu1 %v2369_v0 }
 0x1b4   :  { %2172 = vmatpush3.bf16.msra.mxu0 %v2988_v23 }
 0x1b5   :  { %2020 = vmatmul.mubr.f32.vlgmr.msra.gmra.mrb[0].mxu1 %v981_v31  ;;  %2173 = vmatprep.subr.bf16.mxu0 %v2369_v0 }
 0x1b6   :  { %2226 = vmatpush3.bf16.msra.mxu1 %v2225_v49  ;;  %2054 = vmatprep.mubr.msk.f32.mxu1 %vm2370_vm0, %v2371_v1 }
 0x1b7   :  { %2227 = vmatprep.subr.bf16.mxu1 %v2369_v0 }
 0x1b8   :  { %2175 = vmatpush3.bf16.msra.mxu0 %v2990_v35 }
 0x1ba   :  { %2229 = vmatpush3.bf16.msra.mxu1 %v2228_v39 }
 0x1bb   :  { %1950 = vmatmul.mubr.f32.vlgmr.msra.gmra.mrb[2].mxu0 %v3009_v61  ;;  %2230 = vmatprep.subr.bf16.mxu1 %v2369_v0 }
 0x1be   :  { %2232 = vmatpush3.bf16.msra.mxu1 %v2231_v9 }
 0x1bf   :  { %2233 = vmatprep.subr.bf16.mxu1 %v2369_v0 }
 0x1c2   :  { %2235 = vmatpush3.bf16.msra.mxu1 %v2234_v18 }
 0x1c3   :  { %2236 = vmatprep.subr.bf16.mxu1 %v2369_v0 }
 0x1c6   :  { %2238 = vmatpush3.bf16.msra.mxu1 %v2237_v30 }
 0x1c7   :  { %2239 = vmatprep.subr.bf16.mxu1 %v2369_v0 }
 0x1ca   :  { %2241 = vmatpush3.bf16.msra.mxu1 %v2240_v37 }
 0x1cb   :  { %2242 = vmatprep.subr.bf16.mxu1 %v2369_v0 }
 0x1ce   :  { %2244 = vmatpush3.bf16.msra.mxu1 %v2992_v36 }
 0x1cf   :  { %2245 = vmatprep.subr.bf16.mxu1 %v2369_v0 }
 0x1d2   :  { %2247 = vmatpush3.bf16.msra.mxu1 %v2994_v38 }
 0x1d3   :  { %2248 = vmatprep.subr.bf16.mxu1 %v2369_v0 }
 0x1d5   :  { %2055 = vmatmul.mubr.f32.vlgmr.msra.gmra.mrb[0].mxu1 %v3009_v61 }
 0x1d6   :  { %2250 = vmatpush3.bf16.msra.mxu1 %v2637_v21  ;;  %2089 = vmatprep.mubr.msk.f32.mxu1 %vm2370_vm0, %v2371_v1 }
 0x1d7   :  { %2251 = vmatprep.subr.bf16.mxu1 %v2369_v0 }
 0x1da   :  { %2253 = vmatpush3.bf16.msra.mxu1 %v2667_v40  ;;  %v1683_v40 = vld [vmem:[%s3148_s5] ss:$0 sm:$0xff] }
 0x1db   :  { %2254 = vmatprep.subr.bf16.mxu1 %v2369_v0 }
 0x1de   :  { %2256 = vmatpush3.bf16.msra.mxu1 %v2704_v59 }
 0x1df   :  { %2257 = vmatprep.subr.bf16.mxu1 %v2369_v0 }
 0x1e2   :  { %2259 = vmatpush3.bf16.msra.mxu1 %v2729_v6 }
 0x1e3   :  { %2260 = vmatprep.subr.bf16.mxu1 %v2369_v0 }
 0x1e6   :  { %2262 = vmatpush3.bf16.msra.mxu1 %v2752_v28 }
 0x1e7   :  { %2263 = vmatprep.subr.bf16.mxu1 %v2369_v0 }
 0x1ea   :  { %2265 = vmatpush3.bf16.msra.mxu1 %v2974_v54 }
 0x1eb   :  { %2266 = vmatprep.subr.bf16.mxu1 %v2369_v0 }
 0x1ee   :  { %2268 = vmatpush3.bf16.msra.mxu1 %v2979_v5 }
 0x1ef   :  { %2269 = vmatprep.subr.bf16.mxu1 %v2369_v0 }
 0x1f2   :  { %2271 = vmatpush3.bf16.msra.mxu1 %v2984_v4 }
 0x1f5   :  { %2090 = vmatmul.mubr.f32.vlgmr.msra.gmra.mrb[0].mxu1 %v3009_v61 }
 0x28e   :  { %v1136_v1 = vpop.f32.mrb[2].mxu0 }
 0x28f   :  { %v1951_v21 = vpop.f32.mrb[3].mxu0  ;;  %v2273_v42 = vadd.f32 %v1683_v40, %v1136_v1 }
 0x2c8   :  { %v1535_v53 = vpop.f32.mrb[0].mxu1 }
 0x2c9   :  { %v2274_v58 = vadd.f32 %v2273_v42, %v1535_v53  ;;  %v2091_v59 = vpop.f32.mrb[1].mxu1 }
 0x2cb   :  { %1539 = vst [vmem:[#allocation8] sm:$0xff] %v2274_v58 }
 0x2cc   :  { %2348 = shalt.err (!%p2345_p3)
}
 0x2cd   :  { %s2349_s7 = scalar_lea.hbm %s3149_s6, 128 }
 0x2ce   :  { %p2350_p4 = scmp.ne.s32.totalorder %s3149_s6, %s2349_s7  ;;  %p2353_p5 = scmp.lt.u32.totalorder %s2349_s7, %s3149_s6 }
 0x2d0   :  { %p2355_p6 = pnand %p2353_p5, %p2350_p4 }
 0x2d2   :  { %2358 = shalt.err (!%p2355_p6)
}
 0x2d3   :  { %1549 = dma.vmem_to_hbm [thread:$0]  %s1547_s4, 128, %s3149_s6, [#allocation7]  }
 0x2d4   :  { %2363 = dma.done.wait [#allocation7], 128  }
 0x2d5   :  { %2364 = vsyncadd [#allocation7], 4294967168 }
 0x2d6   :  { %1553 = vsyncpa [#allocation6], 1 }
 0x2d7   :  { %1554 = vsyncpa [#allocation7], 1 }

</bundles_post_ra>
